<compile_context>
chip_gen: v7x
topology: tpu7x:2x2x1
jax: 0.10.0
libtpu: 0.0.40
codegen_flags: <defaults>
</compile_context>

<pallas_src>
import functools

import jax
import jax.numpy as jnp
import numpy as np
from jax import lax
from jax.experimental import pallas as pl
from jax.experimental.pallas import tpu as pltpu


def _basic_block_kernel(x_ref, bn1s_ref, bn1b_ref, w1_ref, bn2s_ref, bn2b_ref,
                        w2_ref, fc1w_ref, fc1b_ref, fc2w_ref, fc2b_ref,
                        out_ref, *, nb, h, w, c):
    """One grid step = `nb` samples, kept lane-dense as (nb*h, w*c).

    x_ref    : (nb*h, w*c)    input rows (row = n*h + y, lane = x*c + ch)
    bn*s/b   : (1, w*c)       folded BN scale/bias, pre-tiled along x
    w1/w2    : (3*w*c, w*c)   bf16 banded conv weights (dy-major; dx folded in)
    fc1w     : (cr, c)  fc1b: (1, cr)    SE squeeze fc
    fc2w     : (cr, c)  fc2b: (1, c)     SE excite fc
    out_ref  : (nb*h, w*c)
    """
    r = nb * h
    wc = w * c

    def conv3x3(a2d, w_ref):
        # (r, wc) f32 -> (r, wc) f32 via one fused MXU matmul against the
        # banded (3*wc, wc) weight.  The three patch pieces are the activation
        # and its +/-1 sublane rolls (taps at y-1, y, y+1); only the y border
        # needs masking — the x "SAME" padding is encoded in the band.
        y_i = lax.broadcasted_iota(jnp.int32, (r, wc), 0) % h
        pieces = []
        for dy in (-1, 0, 1):
            s = a2d
            if dy != 0:
                s = pltpu.roll(s, (-dy) % r, axis=0)      # sublane roll (XLU)
            s = s.astype(jnp.bfloat16)                    # mask AFTER the cast
            if dy == -1:
                s = jnp.where(y_i >= 1, s, 0.0)
            elif dy == 1:
                s = jnp.where(y_i <= h - 2, s, 0.0)
            pieces.append(s)
        patch = jnp.concatenate(pieces, axis=1)           # (r, 3*wc) bf16
        return jnp.dot(patch, w_ref[...],
                       preferred_element_type=jnp.float32)  # (r, wc) f32

    # --- full pre-activation: BN1 -> ReLU -> conv1 --------------------------
    a = jnp.maximum(x_ref[...].astype(jnp.float32) * bn1s_ref[...]
                    + bn1b_ref[...], 0.0)
    c1 = conv3x3(a, w1_ref)

    # --- BN2 -> ReLU -> conv2 -----------------------------------------------
    b = jnp.maximum(c1 * bn2s_ref[...] + bn2b_ref[...], 0.0)
    z = conv3x3(b, w2_ref)                                 # (r, wc) f32

    # --- SE: global avg pool -> fc1 -> ReLU -> fc2 -> sigmoid ---------------
    if w > 1 and (w & (w - 1)) == 0:
        # log-tree reduction over x with full-width lane rolls (XLU slot)
        acc = z
        half = w // 2
        while half >= 1:
            acc = acc + pltpu.roll(acc, (wc - half * c) % wc, axis=1)
            half //= 2
        zc = acc[:, 0:c]                                   # (r, c): sum over x
    else:
        zc = z[:, 0:c]
        for xx in range(1, w):
            zc = zc + z[:, xx * c:(xx + 1) * c]
    pooled = zc.reshape(nb, h, c).sum(axis=1) * (1.0 / (h * w))   # (nb, c)

    # Tiny SE fcs on the VPU (1-row matmuls would waste the MXU epilogue).
    h1 = jnp.sum(pooled[:, None, :] * fc1w_ref[...][None, :, :], axis=-1)
    h1 = jnp.maximum(h1 + fc1b_ref[...], 0.0)                     # (nb, cr)
    g = jnp.sum(h1[:, :, None] * fc2w_ref[...][None, :, :], axis=1)
    g = jax.nn.sigmoid(g + fc2b_ref[...])                         # (nb, c)

    # --- scale + residual add, lane-dense unmasked store --------------------
    gate = jnp.tile(g, (1, w))                                     # (nb, wc)
    zg = (z.reshape(nb, h, wc) * gate[:, None, :]).reshape(r, wc)
    out_ref[...] = (zg + x_ref[...].astype(jnp.float32)).astype(out_ref.dtype)


def _banded_conv_weight(w_hwio, width):
    """(3,3,Cin,Cout) HWIO -> (3*W*C, W*C) bf16 banded matmul weight.

    Row-block dy in {-1,0,+1} is a tri-block-banded (W*C, W*C) matrix that
    applies all three dx taps at once; the missing off-band blocks at the x
    borders implement the conv's "SAME" zero padding for free.
    """
    w_np = np.asarray(w_hwio, np.float32)
    C = w_np.shape[2]
    band = np.zeros((3, width * C, width * C), np.float32)
    for dy in range(3):
        for x_out in range(width):
            for dx in (-1, 0, 1):
                x_in = x_out + dx
                if 0 <= x_in < width:
                    band[dy,
                         x_in * C:(x_in + 1) * C,
                         x_out * C:(x_out + 1) * C] = w_np[dy, dx + 1]
    return jnp.asarray(band.reshape(3 * width * C, width * C), jnp.bfloat16)


def prepare_params(w1_hwio, w2_hwio, bn1_s, bn1_b, bn2_s, bn2_b,
                   fc1_w, fc1_b, fc2_w, fc2_b, width):
    """Pre-layout parameters for the lane-dense kernel (done once, outside)."""
    C = np.asarray(w1_hwio).shape[2]

    def tile_c(v):
        return jnp.tile(jnp.asarray(v, jnp.float32).reshape(1, C), (1, width))

    return dict(
        bn1_s=tile_c(bn1_s), bn1_b=tile_c(bn1_b),
        bn2_s=tile_c(bn2_s), bn2_b=tile_c(bn2_b),
        w1=_banded_conv_weight(w1_hwio, width),
        w2=_banded_conv_weight(w2_hwio, width),
        fc1_w=jnp.asarray(fc1_w, jnp.float32).T,                  # (Cr, C)
        fc1_b=jnp.asarray(fc1_b, jnp.float32).reshape(1, -1),     # (1, Cr)
        fc2_w=jnp.asarray(fc2_w, jnp.float32),                    # (Cr, C)
        fc2_b=jnp.asarray(fc2_b, jnp.float32).reshape(1, -1),     # (1, C)
    )


def basic_block_pallas(x_nhwc, params, *, n_blocks=None, min_rows_per_block=256):
    """min_rows_per_block: 256 fills the 2x256x256 MXU (v6e/v7x); use 128 on v5e."""
    N, H, W, C = x_nhwc.shape
    if n_blocks is None:
        n_blocks = 1
        # First split feeds v7x's two TensorCores / pipelines the x DMA on
        # single-TC chips; further splits only cap per-step rows (~1024) so
        # live temps stay inside v7x's smaller VMEM.  Never split below
        # min_rows_per_block rows of matmul M.
        while (N % (2 * n_blocks) == 0
               and (N // (2 * n_blocks)) * H >= min_rows_per_block
               and (n_blocks == 1 or (N // n_blocks) * H > 1024)):
            n_blocks *= 2
    assert N % n_blocks == 0
    nb = N // n_blocks
    R, WC = nb * H, W * C
    Cr = params["fc1_w"].shape[0]

    x2d = x_nhwc.reshape(N * H, W * C)                            # lane-dense I/O

    # Explicit VMEM budget: double-buffered I/O blocks + bf16 banded weights
    # + headroom for the f32 intermediates / bf16 patch.
    est = (2 * 2 * R * WC * x_nhwc.dtype.itemsize
           + 2 * 2 * 3 * WC * WC * 2
           + 10 * R * WC * 4)
    vmem_limit = int(min(max(2 * est, 16 * 1024 * 1024), 64 * 1024 * 1024))

    kernel = pl.pallas_call(
        functools.partial(_basic_block_kernel, nb=nb, h=H, w=W, c=C),
        out_shape=jax.ShapeDtypeStruct((N * H, W * C), x_nhwc.dtype),
        grid=(n_blocks,),
        in_specs=[
            pl.BlockSpec((R, WC), lambda b: (b, 0)),              # x rows
            pl.BlockSpec((1, WC), lambda b: (0, 0)),              # bn1 scale
            pl.BlockSpec((1, WC), lambda b: (0, 0)),              # bn1 bias
            pl.BlockSpec((3 * WC, WC), lambda b: (0, 0)),         # conv1 banded w
            pl.BlockSpec((1, WC), lambda b: (0, 0)),              # bn2 scale
            pl.BlockSpec((1, WC), lambda b: (0, 0)),              # bn2 bias
            pl.BlockSpec((3 * WC, WC), lambda b: (0, 0)),         # conv2 banded w
            pl.BlockSpec((Cr, C), lambda b: (0, 0)),              # fc1 w
            pl.BlockSpec((1, Cr), lambda b: (0, 0)),              # fc1 b
            pl.BlockSpec((Cr, C), lambda b: (0, 0)),              # fc2 w
            pl.BlockSpec((1, C), lambda b: (0, 0)),               # fc2 b
        ],
        out_specs=pl.BlockSpec((R, WC), lambda b: (b, 0)),
        compiler_params=pltpu.CompilerParams(
            dimension_semantics=("parallel",),
            vmem_limit_bytes=vmem_limit),
    )
    out2d = kernel(x2d,
                   params["bn1_s"], params["bn1_b"], params["w1"],
                   params["bn2_s"], params["bn2_b"], params["w2"],
                   params["fc1_w"], params["fc1_b"],
                   params["fc2_w"], params["fc2_b"])
    return out2d.reshape(N, H, W, C)


if __name__ == "__main__":
    key = jax.random.PRNGKey(0)
    N, C, H, W = 2, 32, 8, 8          # inplanes = planes = 32
    ratio = 16
    Cr = C // ratio
    eps = 1e-5

    ks = jax.random.split(key, 12)
    # PyTorch-convention NCHW input
    x_nchw = jax.random.normal(ks[0], (N, C, H, W), jnp.float32)

    # conv weights kept in HWIO (= transpose of PyTorch OIHW)
    w1_hwio = jax.random.normal(ks[1], (3, 3, C, C), jnp.float32) * 0.1
    w2_hwio = jax.random.normal(ks[2], (3, 3, C, C), jnp.float32) * 0.1

    def bn_fold(kg, kb, km, kv):
        gamma = jax.random.uniform(kg, (C,), jnp.float32, 0.5, 1.5)
        beta = jax.random.normal(kb, (C,), jnp.float32) * 0.1
        mean = jax.random.normal(km, (C,), jnp.float32) * 0.1
        var = jax.random.uniform(kv, (C,), jnp.float32, 0.5, 1.5)
        s = gamma / jnp.sqrt(var + eps)
        b = beta - mean * s
        return s, b

    bn1_s, bn1_b = bn_fold(ks[3], ks[4], ks[5], ks[6])
    bn2_s, bn2_b = bn_fold(ks[7], ks[8], ks[9], ks[10])

    kfc = jax.random.split(ks[11], 4)
    fc1_w = jax.random.normal(kfc[0], (C, Cr), jnp.float32) * 0.2   # (in, out)
    fc1_b = jax.random.normal(kfc[1], (Cr,), jnp.float32) * 0.1
    fc2_w = jax.random.normal(kfc[2], (Cr, C), jnp.float32) * 0.2   # (in, out)
    fc2_b = jax.random.normal(kfc[3], (C,), jnp.float32) * 0.1

    params = prepare_params(w1_hwio, w2_hwio, bn1_s, bn1_b, bn2_s, bn2_b,
                            fc1_w, fc1_b, fc2_w, fc2_b, W)

    # NCHW -> NHWC for the kernel
    x_nhwc = jnp.transpose(x_nchw, (0, 2, 3, 1))
    out_nhwc = jax.block_until_ready(basic_block_pallas(x_nhwc, params))
    out_nchw = jnp.transpose(out_nhwc, (0, 3, 1, 2))  # back to PyTorch layout

    # pure-JAX f32 reference (same eval-mode BN semantics)
    def ref(x):
        a = jnp.maximum(x * bn1_s + bn1_b, 0.0)
        y = lax.conv_general_dilated(a, w1_hwio, (1, 1), "SAME",
                                     dimension_numbers=("NHWC", "HWIO", "NHWC"))
        b = jnp.maximum(y * bn2_s + bn2_b, 0.0)
        z = lax.conv_general_dilated(b, w2_hwio, (1, 1), "SAME",
                                     dimension_numbers=("NHWC", "HWIO", "NHWC"))
        s = jnp.mean(z, axis=(1, 2))
        h = jnp.maximum(s @ fc1_w + fc1_b, 0.0)
        g = jax.nn.sigmoid(h @ fc2_w + fc2_b)
        return z * g[:, None, None, :] + x

    expected = ref(x_nhwc)
    # Tolerance loosened vs f32 reference because conv MXU operands are bf16
    # (accumulation stays f32).
    np.testing.assert_allclose(np.asarray(out_nhwc), np.asarray(expected),
                               rtol=5e-2, atol=5e-2)
    assert out_nchw.shape == (N, C, H, W)
    print("KERNEL_OK")
</pallas_src>

<mosaic_0001>
module attributes {stable_mosaic.version = 11 : i64} {
  func.func @_basic_block_kernel(%arg0: i32, %arg1: memref<16x256xf32, #tpu.memory_space<vmem>>, %arg2: memref<1x256xf32, #tpu.memory_space<vmem>>, %arg3: memref<1x256xf32, #tpu.memory_space<vmem>>, %arg4: memref<768x256xbf16, #tpu.memory_space<vmem>>, %arg5: memref<1x256xf32, #tpu.memory_space<vmem>>, %arg6: memref<1x256xf32, #tpu.memory_space<vmem>>, %arg7: memref<768x256xbf16, #tpu.memory_space<vmem>>, %arg8: memref<2x32xf32, #tpu.memory_space<vmem>>, %arg9: memref<1x2xf32, #tpu.memory_space<vmem>>, %arg10: memref<2x32xf32, #tpu.memory_space<vmem>>, %arg11: memref<1x32xf32, #tpu.memory_space<vmem>>, %arg12: memref<16x256xf32, #tpu.memory_space<vmem>>) attributes {dimension_semantics = [#tpu.dimension_semantics<parallel>], iteration_bounds = array<i64: 1>, scalar_prefetch = 0 : i64, scratch_operands = 0 : i64, tpu.core_type = #tpu.core_type<tc>, window_params = [{transform_indices = @transform_0, window_bounds = array<i64: 16, 256>}, {pipeline_mode = #tpu.pipeline_mode<synchronous>, transform_indices = @transform_1, window_bounds = array<i64: 1, 256>}, {pipeline_mode = #tpu.pipeline_mode<synchronous>, transform_indices = @transform_2, window_bounds = array<i64: 1, 256>}, {pipeline_mode = #tpu.pipeline_mode<synchronous>, transform_indices = @transform_3, window_bounds = array<i64: 768, 256>}, {pipeline_mode = #tpu.pipeline_mode<synchronous>, transform_indices = @transform_4, window_bounds = array<i64: 1, 256>}, {pipeline_mode = #tpu.pipeline_mode<synchronous>, transform_indices = @transform_5, window_bounds = array<i64: 1, 256>}, {pipeline_mode = #tpu.pipeline_mode<synchronous>, transform_indices = @transform_6, window_bounds = array<i64: 768, 256>}, {pipeline_mode = #tpu.pipeline_mode<synchronous>, transform_indices = @transform_7, window_bounds = array<i64: 2, 32>}, {pipeline_mode = #tpu.pipeline_mode<synchronous>, transform_indices = @transform_8, window_bounds = array<i64: 1, 2>}, {pipeline_mode = #tpu.pipeline_mode<synchronous>, transform_indices = @transform_9, window_bounds = array<i64: 2, 32>}, {pipeline_mode = #tpu.pipeline_mode<synchronous>, transform_indices = @transform_10, window_bounds = array<i64: 1, 32>}, {transform_indices = @transform_11, window_bounds = array<i64: 16, 256>}]} {
    %c0 = arith.constant 0 : index
    %c0_0 = arith.constant 0 : index
    %0 = vector.load %arg1[%c0, %c0_0] : memref<16x256xf32, #tpu.memory_space<vmem>>, vector<16x256xf32>
    %c0_1 = arith.constant 0 : index
    %c0_2 = arith.constant 0 : index
    %1 = vector.load %arg2[%c0_1, %c0_2] : memref<1x256xf32, #tpu.memory_space<vmem>>, vector<1x256xf32>
    %2 = vector.broadcast %1 : vector<1x256xf32> to vector<16x256xf32>
    %3 = arith.mulf %0, %2 : vector<16x256xf32>
    %c0_3 = arith.constant 0 : index
    %c0_4 = arith.constant 0 : index
    %4 = vector.load %arg3[%c0_3, %c0_4] : memref<1x256xf32, #tpu.memory_space<vmem>>, vector<1x256xf32>
    %5 = vector.broadcast %4 : vector<1x256xf32> to vector<16x256xf32>
    %6 = arith.addf %3, %5 : vector<16x256xf32>
    %cst = arith.constant 0.000000e+00 : f32
    %7 = vector.broadcast %cst : f32 to vector<16x256xf32>
    %8 = arith.maximumf %6, %7 : vector<16x256xf32>
    %9 = tpu.iota {dimensions = array<i32: 0>} : vector<16x256xi32>
    %c8_i32 = arith.constant 8 : i32
    %c0_i32 = arith.constant 0 : i32
    %10 = arith.cmpi eq, %c8_i32, %c0_i32 : i32
    %c1_i32 = arith.constant 1 : i32
    %11 = arith.select %10, %c1_i32, %c8_i32 : i32
    %12 = vector.broadcast %11 : i32 to vector<16x256xi32>
    %13 = arith.remsi %9, %12 : vector<16x256xi32>
    %c0_i32_5 = arith.constant 0 : i32
    %14 = vector.broadcast %c0_i32_5 : i32 to vector<16x256xi32>
    %15 = arith.cmpi ne, %13, %14 : vector<16x256xi32>
    %c0_i32_6 = arith.constant 0 : i32
    %16 = vector.broadcast %c0_i32_6 : i32 to vector<16x256xi32>
    %17 = arith.cmpi slt, %13, %16 : vector<16x256xi32>
    %c0_i32_7 = arith.constant 0 : i32
    %18 = arith.cmpi slt, %11, %c0_i32_7 : i32
    %19 = vector.broadcast %18 : i1 to vector<16x256xi1>
    %20 = vector.broadcast %19 : vector<16x256xi1> to vector<16x256xi1>
    %21 = arith.xori %17, %20 : vector<16x256xi1>
    %22 = arith.andi %21, %15 : vector<16x256xi1>
    %23 = vector.broadcast %11 : i32 to vector<16x256xi32>
    %24 = arith.addi %13, %23 : vector<16x256xi32>
    %25 = arith.select %22, %24, %13 : vector<16x256xi1>, vector<16x256xi32>
    %c1_i32_8 = arith.constant 1 : i32
    %26 = tpu.dynamic_rotate %8 by %c1_i32_8 dim 0 : vector<16x256xf32>, i32 -> vector<16x256xf32>
    %27 = arith.truncf %26 : vector<16x256xf32> to vector<16x256xbf16>
    %c1_i32_9 = arith.constant 1 : i32
    %28 = vector.broadcast %c1_i32_9 : i32 to vector<16x256xi32>
    %29 = arith.cmpi sge, %25, %28 : vector<16x256xi32>
    %cst_10 = arith.constant 0.000000e+00 : f32
    %30 = arith.truncf %cst_10 : f32 to bf16
    %31 = vector.broadcast %30 : bf16 to vector<16x256xbf16>
    %32 = arith.select %29, %27, %31 : vector<16x256xi1>, vector<16x256xbf16>
    %33 = arith.truncf %8 : vector<16x256xf32> to vector<16x256xbf16>
    %c15_i32 = arith.constant 15 : i32
    %34 = tpu.dynamic_rotate %8 by %c15_i32 dim 0 : vector<16x256xf32>, i32 -> vector<16x256xf32>
    %35 = arith.truncf %34 : vector<16x256xf32> to vector<16x256xbf16>
    %c6_i32 = arith.constant 6 : i32
    %36 = vector.broadcast %c6_i32 : i32 to vector<16x256xi32>
    %37 = arith.cmpi sle, %25, %36 : vector<16x256xi32>
    %cst_11 = arith.constant 0.000000e+00 : f32
    %38 = arith.truncf %cst_11 : f32 to bf16
    %39 = vector.broadcast %38 : bf16 to vector<16x256xbf16>
    %40 = arith.select %37, %35, %39 : vector<16x256xi1>, vector<16x256xbf16>
    %41 = tpu.concatenate %32, %33, %40 in 1 : vector<16x256xbf16>, vector<16x256xbf16>, vector<16x256xbf16> -> vector<16x768xbf16>
    %c0_12 = arith.constant 0 : index
    %c0_13 = arith.constant 0 : index
    %42 = vector.load %arg4[%c0_12, %c0_13] : memref<768x256xbf16, #tpu.memory_space<vmem>>, vector<768x256xbf16>
    %cst_14 = arith.constant dense<0.000000e+00> : vector<16x256xf32>
    %43 = tpu.matmul %41, %42, %cst_14 {dimension_numbers = #tpu.dot_dimension_numbers<[1], [0], [0], [1], [0, 0, 1, 1], [], []>} : vector<16x768xbf16>, vector<768x256xbf16>, vector<16x256xf32> -> vector<16x256xf32>
    %c0_15 = arith.constant 0 : index
    %c0_16 = arith.constant 0 : index
    %44 = vector.load %arg5[%c0_15, %c0_16] : memref<1x256xf32, #tpu.memory_space<vmem>>, vector<1x256xf32>
    %45 = vector.broadcast %44 : vector<1x256xf32> to vector<16x256xf32>
    %46 = arith.mulf %43, %45 : vector<16x256xf32>
    %c0_17 = arith.constant 0 : index
    %c0_18 = arith.constant 0 : index
    %47 = vector.load %arg6[%c0_17, %c0_18] : memref<1x256xf32, #tpu.memory_space<vmem>>, vector<1x256xf32>
    %48 = vector.broadcast %47 : vector<1x256xf32> to vector<16x256xf32>
    %49 = arith.addf %46, %48 : vector<16x256xf32>
    %cst_19 = arith.constant 0.000000e+00 : f32
    %50 = vector.broadcast %cst_19 : f32 to vector<16x256xf32>
    %51 = arith.maximumf %49, %50 : vector<16x256xf32>
    %52 = tpu.iota {dimensions = array<i32: 0>} : vector<16x256xi32>
    %c8_i32_20 = arith.constant 8 : i32
    %c0_i32_21 = arith.constant 0 : i32
    %53 = arith.cmpi eq, %c8_i32_20, %c0_i32_21 : i32
    %c1_i32_22 = arith.constant 1 : i32
    %54 = arith.select %53, %c1_i32_22, %c8_i32_20 : i32
    %55 = vector.broadcast %54 : i32 to vector<16x256xi32>
    %56 = arith.remsi %52, %55 : vector<16x256xi32>
    %c0_i32_23 = arith.constant 0 : i32
    %57 = vector.broadcast %c0_i32_23 : i32 to vector<16x256xi32>
    %58 = arith.cmpi ne, %56, %57 : vector<16x256xi32>
    %c0_i32_24 = arith.constant 0 : i32
    %59 = vector.broadcast %c0_i32_24 : i32 to vector<16x256xi32>
    %60 = arith.cmpi slt, %56, %59 : vector<16x256xi32>
    %c0_i32_25 = arith.constant 0 : i32
    %61 = arith.cmpi slt, %54, %c0_i32_25 : i32
    %62 = vector.broadcast %61 : i1 to vector<16x256xi1>
    %63 = vector.broadcast %62 : vector<16x256xi1> to vector<16x256xi1>
    %64 = arith.xori %60, %63 : vector<16x256xi1>
    %65 = arith.andi %64, %58 : vector<16x256xi1>
    %66 = vector.broadcast %54 : i32 to vector<16x256xi32>
    %67 = arith.addi %56, %66 : vector<16x256xi32>
    %68 = arith.select %65, %67, %56 : vector<16x256xi1>, vector<16x256xi32>
    %c1_i32_26 = arith.constant 1 : i32
    %69 = tpu.dynamic_rotate %51 by %c1_i32_26 dim 0 : vector<16x256xf32>, i32 -> vector<16x256xf32>
    %70 = arith.truncf %69 : vector<16x256xf32> to vector<16x256xbf16>
    %c1_i32_27 = arith.constant 1 : i32
    %71 = vector.broadcast %c1_i32_27 : i32 to vector<16x256xi32>
    %72 = arith.cmpi sge, %68, %71 : vector<16x256xi32>
    %cst_28 = arith.constant 0.000000e+00 : f32
    %73 = arith.truncf %cst_28 : f32 to bf16
    %74 = vector.broadcast %73 : bf16 to vector<16x256xbf16>
    %75 = arith.select %72, %70, %74 : vector<16x256xi1>, vector<16x256xbf16>
    %76 = arith.truncf %51 : vector<16x256xf32> to vector<16x256xbf16>
    %c15_i32_29 = arith.constant 15 : i32
    %77 = tpu.dynamic_rotate %51 by %c15_i32_29 dim 0 : vector<16x256xf32>, i32 -> vector<16x256xf32>
    %78 = arith.truncf %77 : vector<16x256xf32> to vector<16x256xbf16>
    %c6_i32_30 = arith.constant 6 : i32
    %79 = vector.broadcast %c6_i32_30 : i32 to vector<16x256xi32>
    %80 = arith.cmpi sle, %68, %79 : vector<16x256xi32>
    %cst_31 = arith.constant 0.000000e+00 : f32
    %81 = arith.truncf %cst_31 : f32 to bf16
    %82 = vector.broadcast %81 : bf16 to vector<16x256xbf16>
    %83 = arith.select %80, %78, %82 : vector<16x256xi1>, vector<16x256xbf16>
    %84 = tpu.concatenate %75, %76, %83 in 1 : vector<16x256xbf16>, vector<16x256xbf16>, vector<16x256xbf16> -> vector<16x768xbf16>
    %c0_32 = arith.constant 0 : index
    %c0_33 = arith.constant 0 : index
    %85 = vector.load %arg7[%c0_32, %c0_33] : memref<768x256xbf16, #tpu.memory_space<vmem>>, vector<768x256xbf16>
    %cst_34 = arith.constant dense<0.000000e+00> : vector<16x256xf32>
    %86 = tpu.matmul %84, %85, %cst_34 {dimension_numbers = #tpu.dot_dimension_numbers<[1], [0], [0], [1], [0, 0, 1, 1], [], []>} : vector<16x768xbf16>, vector<768x256xbf16>, vector<16x256xf32> -> vector<16x256xf32>
    %c128_i32 = arith.constant 128 : i32
    %87 = tpu.dynamic_rotate %86 by %c128_i32 dim 1 : vector<16x256xf32>, i32 -> vector<16x256xf32>
    %88 = arith.addf %86, %87 : vector<16x256xf32>
    %c192_i32 = arith.constant 192 : i32
    %89 = tpu.dynamic_rotate %88 by %c192_i32 dim 1 : vector<16x256xf32>, i32 -> vector<16x256xf32>
    %90 = arith.addf %88, %89 : vector<16x256xf32>
    %c224_i32 = arith.constant 224 : i32
    %91 = tpu.dynamic_rotate %90 by %c224_i32 dim 1 : vector<16x256xf32>, i32 -> vector<16x256xf32>
    %92 = arith.addf %90, %91 : vector<16x256xf32>
    %93 = vector.extract_strided_slice %92 {offsets = [0, 0], sizes = [16, 32], strides = [1, 1]} : vector<16x256xf32> to vector<16x32xf32>
    %94 = vector.shape_cast %93 : vector<16x32xf32> to vector<2x8x32xf32>
    %cst_35 = arith.constant dense<0.000000e+00> : vector<2x32xf32>
    %95 = vector.multi_reduction <add>, %94, %cst_35 [1] : vector<2x8x32xf32> to vector<2x32xf32>
    %cst_36 = arith.constant 1.562500e-02 : f32
    %96 = vector.broadcast %cst_36 : f32 to vector<2x32xf32>
    %97 = arith.mulf %95, %96 : vector<2x32xf32>
    %98 = vector.shape_cast %97 : vector<2x32xf32> to vector<2x1x32xf32>
    %c0_37 = arith.constant 0 : index
    %c0_38 = arith.constant 0 : index
    %99 = vector.load %arg8[%c0_37, %c0_38] : memref<2x32xf32, #tpu.memory_space<vmem>>, vector<2x32xf32>
    %100 = vector.shape_cast %99 : vector<2x32xf32> to vector<1x2x32xf32>
    %101 = vector.broadcast %98 : vector<2x1x32xf32> to vector<2x2x32xf32>
    %102 = vector.broadcast %100 : vector<1x2x32xf32> to vector<2x2x32xf32>
    %103 = arith.mulf %101, %102 : vector<2x2x32xf32>
    %cst_39 = arith.constant dense<0.000000e+00> : vector<2x2xf32>
    %104 = vector.multi_reduction <add>, %103, %cst_39 [2] : vector<2x2x32xf32> to vector<2x2xf32>
    %c0_40 = arith.constant 0 : index
    %c0_41 = arith.constant 0 : index
    %105 = vector.load %arg9[%c0_40, %c0_41] : memref<1x2xf32, #tpu.memory_space<vmem>>, vector<1x2xf32>
    %106 = vector.broadcast %105 : vector<1x2xf32> to vector<2x2xf32>
    %107 = arith.addf %104, %106 : vector<2x2xf32>
    %cst_42 = arith.constant 0.000000e+00 : f32
    %108 = vector.broadcast %cst_42 : f32 to vector<2x2xf32>
    %109 = arith.maximumf %107, %108 : vector<2x2xf32>
    %110 = vector.shape_cast %109 : vector<2x2xf32> to vector<2x2x1xf32>
    %c0_43 = arith.constant 0 : index
    %c0_44 = arith.constant 0 : index
    %111 = vector.load %arg10[%c0_43, %c0_44] : memref<2x32xf32, #tpu.memory_space<vmem>>, vector<2x32xf32>
    %112 = vector.shape_cast %111 : vector<2x32xf32> to vector<1x2x32xf32>
    %113 = vector.broadcast %110 : vector<2x2x1xf32> to vector<2x2x32xf32>
    %114 = vector.broadcast %112 : vector<1x2x32xf32> to vector<2x2x32xf32>
    %115 = arith.mulf %113, %114 : vector<2x2x32xf32>
    %cst_45 = arith.constant dense<0.000000e+00> : vector<2x32xf32>
    %116 = vector.multi_reduction <add>, %115, %cst_45 [1] : vector<2x2x32xf32> to vector<2x32xf32>
    %c0_46 = arith.constant 0 : index
    %c0_47 = arith.constant 0 : index
    %117 = vector.load %arg11[%c0_46, %c0_47] : memref<1x32xf32, #tpu.memory_space<vmem>>, vector<1x32xf32>
    %118 = vector.broadcast %117 : vector<1x32xf32> to vector<2x32xf32>
    %119 = arith.addf %116, %118 : vector<2x32xf32>
    %120 = arith.negf %119 : vector<2x32xf32>
    %121 = math.exp %120 : vector<2x32xf32>
    %cst_48 = arith.constant 1.000000e+00 : f32
    %122 = vector.broadcast %cst_48 : f32 to vector<2x32xf32>
    %123 = arith.addf %122, %121 : vector<2x32xf32>
    %124 = arith.divf %122, %123 : vector<2x32xf32>
    %125 = tpu.concatenate %124, %124, %124, %124, %124, %124, %124, %124 in 1 : vector<2x32xf32>, vector<2x32xf32>, vector<2x32xf32>, vector<2x32xf32>, vector<2x32xf32>, vector<2x32xf32>, vector<2x32xf32>, vector<2x32xf32> -> vector<2x256xf32>
    %126 = vector.shape_cast %86 : vector<16x256xf32> to vector<2x8x256xf32>
    %127 = vector.shape_cast %125 : vector<2x256xf32> to vector<2x1x256xf32>
    %128 = vector.broadcast %127 : vector<2x1x256xf32> to vector<2x8x256xf32>
    %129 = arith.mulf %126, %128 : vector<2x8x256xf32>
    %130 = vector.shape_cast %129 : vector<2x8x256xf32> to vector<16x256xf32>
    %c0_49 = arith.constant 0 : index
    %c0_50 = arith.constant 0 : index
    %131 = vector.load %arg1[%c0_49, %c0_50] : memref<16x256xf32, #tpu.memory_space<vmem>>, vector<16x256xf32>
    %132 = arith.addf %130, %131 : vector<16x256xf32>
    %c0_51 = arith.constant 0 : index
    %c0_52 = arith.constant 0 : index
    %133 = vector.load %arg12[%c0_51, %c0_52] : memref<16x256xf32, #tpu.memory_space<vmem>>, vector<16x256xf32>
    tpu.vector_store %arg12[%c0_51, %c0_52], %132 {strides = array<i32>} : memref<16x256xf32, #tpu.memory_space<vmem>>, vector<16x256xf32>,
    return
  }
  func.func @transform_0(%arg0: i32) -> (i32, i32) {
    %c0_i32 = arith.constant 0 : i32
    %c0_i32_0 = arith.constant 0 : i32
    return %arg0, %c0_i32 : i32, i32
  }
  func.func @transform_1(%arg0: i32) -> (i32, i32) {
    %c0_i32 = arith.constant 0 : i32
    %c0_i32_0 = arith.constant 0 : i32
    %c0_i32_1 = arith.constant 0 : i32
    return %c0_i32, %c0_i32_0 : i32, i32
  }
  func.func @transform_2(%arg0: i32) -> (i32, i32) {
    %c0_i32 = arith.constant 0 : i32
    %c0_i32_0 = arith.constant 0 : i32
    %c0_i32_1 = arith.constant 0 : i32
    return %c0_i32, %c0_i32_0 : i32, i32
  }
  func.func @transform_3(%arg0: i32) -> (i32, i32) {
    %c0_i32 = arith.constant 0 : i32
    %c0_i32_0 = arith.constant 0 : i32
    %c0_i32_1 = arith.constant 0 : i32
    return %c0_i32, %c0_i32_0 : i32, i32
  }
  func.func @transform_4(%arg0: i32) -> (i32, i32) {
    %c0_i32 = arith.constant 0 : i32
    %c0_i32_0 = arith.constant 0 : i32
    %c0_i32_1 = arith.constant 0 : i32
    return %c0_i32, %c0_i32_0 : i32, i32
  }
  func.func @transform_5(%arg0: i32) -> (i32, i32) {
    %c0_i32 = arith.constant 0 : i32
    %c0_i32_0 = arith.constant 0 : i32
    %c0_i32_1 = arith.constant 0 : i32
    return %c0_i32, %c0_i32_0 : i32, i32
  }
  func.func @transform_6(%arg0: i32) -> (i32, i32) {
    %c0_i32 = arith.constant 0 : i32
    %c0_i32_0 = arith.constant 0 : i32
    %c0_i32_1 = arith.constant 0 : i32
    return %c0_i32, %c0_i32_0 : i32, i32
  }
  func.func @transform_7(%arg0: i32) -> (i32, i32) {
    %c0_i32 = arith.constant 0 : i32
    %c0_i32_0 = arith.constant 0 : i32
    %c0_i32_1 = arith.constant 0 : i32
    return %c0_i32, %c0_i32_0 : i32, i32
  }
  func.func @transform_8(%arg0: i32) -> (i32, i32) {
    %c0_i32 = arith.constant 0 : i32
    %c0_i32_0 = arith.constant 0 : i32
    %c0_i32_1 = arith.constant 0 : i32
    return %c0_i32, %c0_i32_0 : i32, i32
  }
  func.func @transform_9(%arg0: i32) -> (i32, i32) {
    %c0_i32 = arith.constant 0 : i32
    %c0_i32_0 = arith.constant 0 : i32
    %c0_i32_1 = arith.constant 0 : i32
    return %c0_i32, %c0_i32_0 : i32, i32
  }
  func.func @transform_10(%arg0: i32) -> (i32, i32) {
    %c0_i32 = arith.constant 0 : i32
    %c0_i32_0 = arith.constant 0 : i32
    %c0_i32_1 = arith.constant 0 : i32
    return %c0_i32, %c0_i32_0 : i32, i32
  }
  func.func @transform_11(%arg0: i32) -> (i32, i32) {
    %c0_i32 = arith.constant 0 : i32
    %c0_i32_0 = arith.constant 0 : i32
    return %arg0, %c0_i32 : i32, i32
  }
}

</mosaic_0001>

<bundles_post_ra>
// kernel: tpu_custom_call.1
= control target key start
LH: loop header
LB: loop body
LE: loop exit
PB: predicated region body
PF: predicated region fallthrough
CT: control target
= control target key end

     0   :  { %16 = vsyncpa [#allocation3], 0  ;;  %s2879_s0 = inlined_call_operand.hbm [shape: f32[16,256], index: 0, kind: input, shape index: {}]   ;;  %s2880_s1 = inlined_call_operand.vmem [shape: f32[1,256], index: 1, kind: input, shape index: {}]   ;;  %s2881_s2 = inlined_call_operand.vmem [shape: f32[1,256], index: 2, kind: input, shape index: {}]   ;;  %s2882_s3 = inlined_call_operand.hbm [shape: bf16[768,256], index: 3, kind: input, shape index: {}]   ;;  %s2883_s4 = inlined_call_operand.vmem [shape: f32[1,256], index: 4, kind: input, shape index: {}]   ;;  %s2884_s5 = inlined_call_operand.vmem [shape: f32[1,256], index: 5, kind: input, shape index: {}]   ;;  %s2885_s6 = inlined_call_operand.hbm [shape: bf16[768,256], index: 6, kind: input, shape index: {}]   ;;  %s2886_s7 = inlined_call_operand.vmem [shape: f32[2,32], index: 7, kind: input, shape index: {}]   ;;  %s2887_s8 = inlined_call_operand.vmem [shape: f32[1,2], index: 8, kind: input, shape index: {}]   ;;  %s2888_s9 = inlined_call_operand.vmem [shape: f32[2,32], index: 9, kind: input, shape index: {}]   ;;  %s2889_s10 = inlined_call_operand.vmem [shape: f32[1,32], index: 10, kind: input, shape index: {}]   ;;  %s2890_s11 = inlined_call_operand.hbm [shape: f32[16,256], index: 11, kind: output, shape index: {}]  }
   0x1   :  { %17 = vsyncpa [#allocation6], 0 }
   0x2   :  { %18 = vsyncpa [#allocation4], 0  ;;  %s2500_s17 = smov [#allocation5]   ;;  %s2406_s21 = scalar_lea.hbm %s2882_s3, 12288 }
   0x3   :  { %s40_s18 = sshll.u32 %s2500_s17, 4  ;;  %p2407_p0 = scmp.ne.s32.totalorder %s2882_s3, %s2406_s21  ;;  %s41_s18 = int_to_ptr.vmem [resolvable:$true] %s40_s18 }
   0x4   :  { %p2410_p1 = scmp.lt.u32.totalorder %s2406_s21, %s2882_s3 }
   0x6   :  { %p2412_p2 = pnand %p2410_p1, %p2407_p0 }
   0x8   :  { %2415 = shalt.err (!%p2412_p2)
}
   0x9   :  { %s2416_s26 = scalar_lea.vmem %s41_s18, 12288  ;;  %p2421_p4 = scmp.lt.s32.totalorder %s41_s18, %s41_s18 }
   0xa   :  { %p2417_p3 = scmp.ne.s32.totalorder %s41_s18, %s2416_s26  ;;  %p2422_p5 = scmp.lt.s32.totalorder %s2416_s26, %s2416_s26 }
   0xc   :  { %p2423_p6 = por %p2422_p5, %p2421_p4 }
   0xe   :  { %p2424_p7 = pnand %p2423_p6, %p2417_p3 }
  0x10   :  { %2427 = shalt.err (!%p2424_p7)
}
  0x11   :  { %s2501_s27 = smov 128   ;;  %s2502_s28 = smov 8  }
  0x12   :  { %46 = dma.hbm_to_vmem [thread:$0]  %s2882_s3, 12288, %s41_s18, [#allocation6], %s2501_s27, %s2501_s27, %s2502_s28  }
  0x13   :  { %s2503_s12 = smov [#allocation2]   ;;  %s2428_s16 = scalar_lea.hbm %s2879_s0, 512 }
  0x14   :  { %s24_s13 = sshll.u32 %s2503_s12, 4  ;;  %p2429_p8 = scmp.ne.s32.totalorder %s2879_s0, %s2428_s16  ;;  %s25_s13 = int_to_ptr.vmem [resolvable:$true] %s24_s13 }
  0x15   :  { %p2432_p9 = scmp.lt.u32.totalorder %s2428_s16, %s2879_s0 }
  0x17   :  { %p2434_p10 = pnand %p2432_p9, %p2429_p8 }
  0x19   :  { %2437 = shalt.err (!%p2434_p10)
}
  0x1a   :  { %s2438_s22 = scalar_lea.vmem %s25_s13, 512  ;;  %p2443_p12 = scmp.lt.s32.totalorder %s25_s13, %s25_s13 }
  0x1b   :  { %p2439_p11 = scmp.ne.s32.totalorder %s25_s13, %s2438_s22  ;;  %p2444_p13 = scmp.lt.s32.totalorder %s2438_s22, %s2438_s22 }
  0x1d   :  { %p2445_p0 = por %p2444_p13, %p2443_p12 }
  0x1f   :  { %p2446_p1 = pnand %p2445_p0, %p2439_p11 }
  0x21   :  { %2449 = shalt.err (!%p2446_p1)
}
  0x22   :  { %s2504_s3 = smov 256   ;;  %s2505_s18 = smov 16  }
  0x23   :  { %30 = dma.hbm_to_vmem [thread:$0]  %s2879_s0, 512, %s25_s13, [#allocation3], %s2504_s3, %s2504_s3, %s2505_s18  }
  0x24   :  { %s2506_s25 = smov [#allocation7]   ;;  %s2450_s12 = scalar_lea.hbm %s2885_s6, 12288 }
  0x25   :  { %s56_s26 = sshll.u32 %s2506_s25, 4  ;;  %p2451_p2 = scmp.ne.s32.totalorder %s2885_s6, %s2450_s12  ;;  %s57_s26 = int_to_ptr.vmem [resolvable:$true] %s56_s26 }
  0x26   :  { %p2454_p3 = scmp.lt.u32.totalorder %s2450_s12, %s2885_s6 }
  0x28   :  { %p2456_p4 = pnand %p2454_p3, %p2451_p2 }
  0x2a   :  { %2459 = shalt.err (!%p2456_p4)
}
  0x2b   :  { %s2460_s19 = scalar_lea.vmem %s57_s26, 12288  ;;  %p2465_p6 = scmp.lt.s32.totalorder %s57_s26, %s57_s26 }
  0x2c   :  { %p2461_p5 = scmp.ne.s32.totalorder %s57_s26, %s2460_s19  ;;  %p2466_p7 = scmp.lt.s32.totalorder %s2460_s19, %s2460_s19 }
  0x2e   :  { %p2467_p8 = por %p2466_p7, %p2465_p6 }
  0x30   :  { %p2468_p9 = pnand %p2467_p8, %p2461_p5 }
  0x32   :  { %2471 = shalt.err (!%p2468_p9)
}
  0x33   :  { %62 = dma.hbm_to_vmem [thread:$0]  %s2885_s6, 12288, %s57_s26, [#allocation6], %s2501_s27, %s2501_s27, %s2502_s28  }
  0x34   :  { %2494 = dma.done.wait [#allocation3], 512  }
  0x35   :  { %2495 = vsyncadd [#allocation3], 4294966784 }
  0x36   :  { %2496 = dma.done.wait [#allocation6], 24576  }
  0x37   :  { %2497 = vsyncadd [#allocation6], 4294942720  ;;  %v2507_v0 = vmov 0   ;;  %v2106_v1 = vld [vmem:[#allocation5 + $0x4] ss:$8 sps:$4 sm:$0xff]   ;;  %v89_v6 = vlaneseq  ;;  %v86_v25 = vld [vmem:[#allocation2 + $0x18] sm:$0xff] }
  0x38   :  { %2105 = vset.pattern.permute.xlu0 %v2507_v0  ;;  %2104 = vset.pattern.permute.xlu1 %v2507_v0  ;;  %v2108_v2 = vld [vmem:[#allocation5] ss:$8 sps:$4 sm:$0xff]   ;;  %v2109_v3 = vld [vmem:[#allocation5 + $0x14] ss:$8 sps:$4 sm:$0xff]   ;;  %v2111_v4 = vld [vmem:[#allocation5 + $0x10] ss:$8 sps:$4 sm:$0xff]  }
  0x39   :  { %774 = vmatprep.subr.bf16.mxu0 %v2106_v1  ;;  %v2112_v5 = vld [vmem:[#allocation5 + $0x24] ss:$8 sps:$4 sm:$0xff]   ;;  %v2114_v7 = vld [vmem:[#allocation5 + $0x20] ss:$8 sps:$4 sm:$0xff]   ;;  %v2115_v8 = vld [vmem:[#allocation5 + $0x34] ss:$8 sps:$4 sm:$0xff]  }
  0x3a   :  { %775 = vmatpush1.bf16.msra.mxu0 %v2108_v2  ;;  %v2620_v9 = vshrl.u32 %v89_v6, 7  ;;  %v2117_v10 = vld [vmem:[#allocation5 + $0x30] ss:$8 sps:$4 sm:$0xff]   ;;  %v2118_v11 = vld [vmem:[#allocation5 + $0x44] ss:$8 sps:$4 sm:$0xff]   ;;  %vm1686_vm12 = vcmask 261120  }
  0x3b   :  { %776 = vmatprep.subr.bf16.mxu0 %v2109_v3  ;;  %v2120_v13 = vld [vmem:[#allocation5 + $0x40] ss:$8 sps:$4 sm:$0xff]   ;;  %v2121_v15 = vld [vmem:[#allocation5 + $0x54] ss:$8 sps:$4 sm:$0xff]   ;;  %v2123_v17 = vld [vmem:[#allocation5 + $0x50] ss:$8 sps:$4 sm:$0xff]  }
  0x3c   :  { %v2623_v12 = vadd.s32 8, %v2620_v9  ;;  %v130_v14 = vand.u32 7, %v2620_v9  ;;  %v2628_v18 = vsub.s32 0, %v2620_v9  ;;  %v2631_v19 = vsub.s32 1, %v2620_v9  ;;  %v2124_v21 = vld [vmem:[#allocation5 + $0x64] ss:$8 sps:$4 sm:$0xff]  }
  0x3d   :  { %v2126_v23 = vld [vmem:[#allocation5 + $0x60] ss:$8 sps:$4 sm:$0xff]   ;;  %v2127_v31 = vld [vmem:[#allocation5 + $0x74] ss:$8 sps:$4 sm:$0xff]   ;;  %v2129_v41 = vld [vmem:[#allocation5 + $0x70] ss:$8 sps:$4 sm:$0xff]  }
  0x3e   :  { %777 = vmatpush1.bf16.msra.mxu0 %v2111_v4  ;;  %v137_v16 = vand.u32 7, %v2623_v12  ;;  %vm2635_vm0 = vcmp.ge.s32.totalorder %v130_v14, 1  ;;  %v84_v24 = vld [vmem:[#allocation2 + $0x8] sm:$0xff]  ;;  %v87_v26 = vld [vmem:[%s2880_s1] sm:$0x3]  ;;  %v85_v36 = vld [vmem:[#allocation2 + $0x10] sm:$0xff] }
  0x3f   :  { %778 = vmatprep.subr.bf16.mxu0 %v2112_v5  ;;  %v103_v27 = vld [vmem:[%s2881_s2] sm:$0x3]  ;;  %vm163_vm2 = vmpackc.low %vm2635_vm0, %vm2635_vm0  ;;  %v92_v28 = vrot.slane %v87_v26, %v2628_v18  ;;  %v96_v29 = vrot.slane %v87_v26, %v2631_v19  ;;  %v2130_v44 = vld [vmem:[#allocation5 + $0x84] ss:$8 sps:$4 sm:$0xff]   ;;  %vm154_vm4 = vcmp.lt.s32.totalorder %v2620_v9, 1  ;;  %vm179_vm6 = vcmp.lt.s32.totalorder %v2620_v9, 7 }
  0x40   :  { %vm2641_vm1 = vcmp.ge.s32.totalorder %v137_v16, 1  ;;  %v112_v30 = vrot.slane %v103_v27, %v2631_v19  ;;  %v108_v32 = vrot.slane %v103_v27, %v2628_v18  ;;  %v83_v35 = vld [vmem:[#allocation2] sm:$0xff]  ;;  %v165_v37 = vsel %vm163_vm2, 65537, %v2507_v0  ;;  %v2133_v55 = vld [vmem:[#allocation5 + $0x94] ss:$8 sps:$4 sm:$0xff]   ;;  %s2512_s30 = smov [#allocation8]  }
  0x41   :  { %vm164_vm3 = vmpackc.low %vm2641_vm1, %vm2641_vm1  ;;  %v100_v33 = vmul.f32 %v96_v29, %v84_v24  ;;  %v102_v34 = vmul.f32 %v96_v29, %v86_v25  ;;  %v99_v39 = vmul.f32 %v92_v28, %v83_v35  ;;  %v101_v40 = vmul.f32 %v92_v28, %v85_v36  ;;  %v2132_v52 = vld [vmem:[#allocation5 + $0x80] ss:$8 sps:$4 sm:$0xff]   ;;  %v2135_v61 = vld [vmem:[#allocation5 + $0x90] ss:$8 sps:$4 sm:$0xff]   ;;  %s1856_s12 = sshll.u32 %s2512_s30, 4  ;;  %s1857_s12 = int_to_ptr.vmem [resolvable:$true] %s1856_s12 }
  0x42   :  { %779 = vmatpush1.bf16.msra.mxu0 %v2114_v7  ;;  %v166_v38 = vsel %vm164_vm3, 65537, %v2507_v0  ;;  %v2136_v62 = vld [vmem:[#allocation5 + $0xa4] ss:$8 sps:$4 sm:$0xff]   ;;  %v2138_v63 = vld [vmem:[#allocation5 + $0xa0] ss:$8 sps:$4 sm:$0xff]   ;;  %vm186_vm7 = vcmp.le.s32.totalorder %v130_v14, 6  ;;  %p2477_p11 = scmp.lt.s32.totalorder %s1857_s12, %s1857_s12 }
  0x43   :  { %780 = vmatprep.subr.bf16.mxu0 %v2115_v8  ;;  %v116_v42 = vadd.f32 %v112_v30, %v100_v33  ;;  %v118_v43 = vadd.f32 %v112_v30, %v102_v34  ;;  %v115_v45 = vadd.f32 %v108_v32, %v99_v39  ;;  %v117_v46 = vadd.f32 %v108_v32, %v101_v40  ;;  %v2139_v1 = vld [vmem:[#allocation5 + $0xb4] ss:$8 sps:$4 sm:$0xff]   ;;  %v2141_v2 = vld [vmem:[#allocation5 + $0xb0] ss:$8 sps:$4 sm:$0xff]   ;;  %v2142_v3 = vld [vmem:[#allocation5 + $0xc4] ss:$8 sps:$4 sm:$0xff]  }
  0x44   :  { %v1869_v49 = vcombine.low %v165_v37, %v166_v38  ;;  %v2144_v4 = vld [vmem:[#allocation5 + $0xc0] ss:$8 sps:$4 sm:$0xff]   ;;  %v2145_v5 = vld [vmem:[#allocation5 + $0xd4] ss:$8 sps:$4 sm:$0xff]   ;;  %v2147_v6 = vld [vmem:[#allocation5 + $0xd0] ss:$8 sps:$4 sm:$0xff]  }
  0x45   :  { %v2663_v47 = vmax.f32 %v116_v42, 0.0  ;;  %v2665_v48 = vmax.f32 %v118_v43, 0.0  ;;  %v2668_v50 = vmax.f32 %v115_v45, 0.0  ;;  %v2670_v51 = vmax.f32 %v117_v46, 0.0  ;;  %v2148_v7 = vld [vmem:[#allocation5 + $0xe4] ss:$8 sps:$4 sm:$0xff]   ;;  %vm188_vm9 = vmpackc.low %vm186_vm7, %vm186_vm7 }
  0x46   :  { %781 = vmatpush1.bf16.msra.mxu0 %v2117_v10  ;;  %vm2680_vm5 = vcmp.ne.s16.totalorder %v1869_v49, 0  ;;  %v2150_v8 = vld [vmem:[#allocation5 + $0xe0] ss:$8 sps:$4 sm:$0xff]   ;;  %vm187_vm8 = vcmp.le.s32.totalorder %v137_v16, 6  ;;  %v2157_v36 = vld [vmem:[#allocation5 + $0x110] ss:$8 sps:$4 sm:$0xff]  }
  0x47   :  { %782 = vmatprep.subr.bf16.mxu0 %v2118_v11  ;;  %v151_v53 = vrot.slane %v2663_v47, 7  ;;  %v153_v54 = vrot.slane %v2665_v48, 7  ;;  %v173_v56 = vpack.c.bf16 %v2670_v51, %v2668_v50  ;;  %v150_v10 = vrot.slane %v2668_v50, 7  ;;  %v2154_v26 = vld [vmem:[#allocation5 + $0x100] ss:$8 sps:$4 sm:$0xff]   ;;  %vm189_vm10 = vmpackc.low %vm187_vm8, %vm187_vm8  ;;  %s2472_s14 = scalar_lea.vmem %s1857_s12, 512 }
  0x48   :  { %v152_v11 = vrot.slane %v2670_v51, 7  ;;  %v176_v22 = vrot.slane %v2663_v47, 1  ;;  %v175_v25 = vrot.slane %v2668_v50, 1  ;;  %v174_v27 = vpack.c.bf16 %v2665_v48, %v2663_v47  ;;  %v2162_v14 = vld [vmem:[#allocation5 + $0x124] ss:$8 sps:$4 sm:$0xff]   ;;  %p2473_p10 = scmp.ne.s32.totalorder %s1857_s12, %s2472_s14  ;;  %p2478_p12 = scmp.lt.s32.totalorder %s2472_s14, %s2472_s14 }
  0x49   :  { %v156_v57 = vsel %vm154_vm4, %v151_v53, %v153_v54  ;;  %v158_v58 = vsel %vm154_vm4, %v153_v54, %v151_v53  ;;  %v177_v30 = vrot.slane %v2670_v51, 1  ;;  %v2726_v12 = vsel %vm188_vm9, 65537, %v2507_v0  ;;  %v2250_v37 = vld [vmem:[#allocation7 + $0x4] ss:$8 sps:$4 sm:$0xff]   ;;  %v2252_v38 = vld [vmem:[#allocation7] ss:$8 sps:$4 sm:$0xff]  }
  0x4a   :  { %783 = vmatpush1.bf16.msra.mxu0 %v2120_v13  ;;  %v160_v60 = vpack.c.bf16 %v156_v57, %v158_v58  ;;  %v2151_v13 = vld [vmem:[#allocation5 + $0xf4] ss:$8 sps:$4 sm:$0xff]   ;;  %v157_v20 = vsel %vm154_vm4, %v152_v11, %v150_v10  ;;  %v2729_v16 = vsel %vm189_vm10, 65537, %v2507_v0  ;;  %v2160_v39 = vld [vmem:[#allocation5 + $0x120] ss:$8 sps:$4 sm:$0xff]   ;;  %1541 = vmatprep.subr.bf16.mxu1 %v2250_v37  ;;  %vm1706_vm13 = vcmask 254976   ;;  %p2479_p13 = por %p2478_p12, %p2477_p11 }
  0x4b   :  { %784 = vmatprep.subr.bf16.mxu0 %v2121_v15  ;;  %v2153_v15 = vld [vmem:[#allocation5 + $0xf0] ss:$8 sps:$4 sm:$0xff]   ;;  %v2715_v33 = vsel %vm179_vm6, %v175_v25, %v177_v30  ;;  %v2719_v34 = vsel %vm179_vm6, %v177_v30, %v175_v25  ;;  %v1870_v40 = vcombine.low %v2726_v12, %v2729_v16  ;;  %v2165_v42 = vld [vmem:[#allocation5 + $0x134] ss:$8 sps:$4 sm:$0xff]   ;;  %1542 = vmatpush1.bf16.msra.mxu1 %v2252_v38  ;;  %v2168_v46 = vld [vmem:[#allocation5 + $0x144] ss:$8 sps:$4 sm:$0xff]  }
  0x4c   :  { %1967 = vmatprep.mubr.msk.bf16.mxu0 %vm2680_vm5, %v160_v60  ;;  %v184_v35 = vpack.c.bf16 %v2719_v34, %v2715_v33  ;;  %v2255_v43 = vld [vmem:[#allocation7 + $0x10] ss:$8 sps:$4 sm:$0xff]   ;;  %v2258_v0 = vld [vmem:[#allocation7 + $0x20] ss:$8 sps:$4 sm:$0xff]   ;;  %v2259_v47 = vld [vmem:[#allocation7 + $0x34] ss:$8 sps:$4 sm:$0xff]   ;;  %p2480_p0 = pnand %p2479_p13, %p2473_p10 }
  0x4d   :  { %v2163_v45 = vld [vmem:[#allocation5 + $0x130] ss:$8 sps:$4 sm:$0xff]   ;;  %v2171_v49 = vld [vmem:[#allocation5 + $0x154] ss:$8 sps:$4 sm:$0xff]   ;;  %v2262_v53 = vld [vmem:[#allocation7 + $0x44] ss:$8 sps:$4 sm:$0xff]  }
  0x4e   :  { %785 = vmatpush1.bf16.msra.mxu0 %v2123_v17  ;;  %v155_v17 = vsel %vm154_vm4, %v150_v10, %v152_v11  ;;  %v2169_v54 = vld [vmem:[#allocation5 + $0x150] ss:$8 sps:$4 sm:$0xff]   ;;  %v2264_v57 = vld [vmem:[#allocation7 + $0x40] ss:$8 sps:$4 sm:$0xff]   ;;  %v2265_v60 = vld [vmem:[#allocation7 + $0x54] ss:$8 sps:$4 sm:$0xff]  }
  0x4f   :  { %786 = vmatprep.subr.bf16.mxu0 %v2124_v21  ;;  %v2156_v21 = vld [vmem:[#allocation5 + $0x104] ss:$8 sps:$4 sm:$0xff]   ;;  %v159_v24 = vpack.c.bf16 %v155_v17, %v157_v20  ;;  %v2172_v58 = vld [vmem:[#allocation5 + $0x160] ss:$8 sps:$4 sm:$0xff]   ;;  %v2181_v10 = vld [vmem:[#allocation5 + $0x190] ss:$8 sps:$4 sm:$0xff]  }
  0x50   :  { %v2186_v11 = vld [vmem:[#allocation5 + $0x1a4] ss:$8 sps:$4 sm:$0xff]   ;;  %v2184_v17 = vld [vmem:[#allocation5 + $0x1a0] ss:$8 sps:$4 sm:$0xff]   ;;  %v2189_v20 = vld [vmem:[#allocation5 + $0x1b4] ss:$8 sps:$4 sm:$0xff]  }
  0x51   :  { %v2282_v25 = vld [vmem:[#allocation7 + $0xa0] ss:$8 sps:$4 sm:$0xff]   ;;  %v2195_v30 = vld [vmem:[#allocation5 + $0x1d4] ss:$8 sps:$4 sm:$0xff]   ;;  %v2198_v37 = vld [vmem:[#allocation5 + $0x1e4] ss:$8 sps:$4 sm:$0xff]  }
  0x52   :  { %787 = vmatpush1.bf16.msra.mxu0 %v2126_v23  ;;  %v178_v23 = vrot.slane %v2665_v48, 1  ;;  %v2166_v48 = vld [vmem:[#allocation5 + $0x140] ss:$8 sps:$4 sm:$0xff]   ;;  %vm2736_vm11 = vcmp.ne.s16.totalorder %v1870_v40, 0  ;;  %v2213_v16 = vld [vmem:[#allocation5 + $0x234] ss:$8 sps:$4 sm:$0xff]  }
  0x53   :  { %788 = vmatprep.subr.bf16.mxu0 %v2127_v31  ;;  %v2159_v31 = vld [vmem:[#allocation5 + $0x114] ss:$8 sps:$4 sm:$0xff]   ;;  %v2196_v38 = vld [vmem:[#allocation5 + $0x1e0] ss:$8 sps:$4 sm:$0xff]   ;;  %v2211_v40 = vld [vmem:[#allocation5 + $0x230] ss:$8 sps:$4 sm:$0xff]  }
  0x54   :  { %v2700_v28 = vsel %vm179_vm6, %v176_v22, %v178_v23  ;;  %v2704_v29 = vsel %vm179_vm6, %v178_v23, %v176_v22  ;;  %v2280_v22 = vld [vmem:[#allocation7 + $0xa4] ss:$8 sps:$4 sm:$0xff]   ;;  %v2187_v23 = vld [vmem:[#allocation5 + $0x1b0] ss:$8 sps:$4 sm:$0xff]   ;;  %v2208_v12 = vld [vmem:[#allocation5 + $0x220] ss:$8 sps:$4 sm:$0xff]  }
  0x55   :  { %v185_v32 = vpack.c.bf16 %v2704_v29, %v2700_v28  ;;  %v2214_v50 = vld [vmem:[#allocation5 + $0x240] ss:$8 sps:$4 sm:$0xff]   ;;  %v2219_v51 = vld [vmem:[#allocation5 + $0x254] ss:$8 sps:$4 sm:$0xff]   ;;  %v2222_v28 = vld [vmem:[#allocation5 + $0x264] ss:$8 sps:$4 sm:$0xff]  }
  0x56   :  { %789 = vmatpush1.bf16.msra.mxu0 %v2129_v41  ;;  %v2253_v41 = vld [vmem:[#allocation7 + $0x14] ss:$8 sps:$4 sm:$0xff]   ;;  %v2220_v29 = vld [vmem:[#allocation5 + $0x260] ss:$8 sps:$4 sm:$0xff]   ;;  %v2313_v59 = vld [vmem:[#allocation7 + $0x150] ss:$8 sps:$4 sm:$0xff]  }
  0x57   :  { %790 = vmatprep.subr.bf16.mxu0 %v2130_v44  ;;  %1543 = vmatprep.subr.bf16.mxu1 %v2253_v41  ;;  %v2256_v44 = vld [vmem:[#allocation7 + $0x24] ss:$8 sps:$4 sm:$0xff]   ;;  %v2199_v41 = vld [vmem:[#allocation5 + $0x1f0] ss:$8 sps:$4 sm:$0xff]   ;;  %v903_v33 = vld [vmem:[%s2883_s4] sm:$0x3] }
  0x58   :  { %1544 = vmatpush1.bf16.msra.mxu1 %v2255_v43  ;;  %v2202_v43 = vld [vmem:[#allocation5 + $0x200] ss:$8 sps:$4 sm:$0xff]   ;;  %s2508_s4 = smov 64   ;;  %vm1778_vm14 = vcmask 1041409   ;;  %vm1791_vm15 = vcmask 523264   ;;  %vm1793_vm0 = vcmask 785408  }
  0x59   :  { %1545 = vmatprep.subr.bf16.mxu1 %v2256_v44  ;;  %v2207_v44 = vld [vmem:[#allocation5 + $0x214] ss:$8 sps:$4 sm:$0xff]   ;;  %v919_v34 = vld [vmem:[%s2884_s5] sm:$0x3]  ;;  %s2509_s5 = smov 96  }
  0x5a   :  { %791 = vmatpush1.bf16.msra.mxu0 %v2132_v52  ;;  %v2261_v52 = vld [vmem:[#allocation7 + $0x30] ss:$8 sps:$4 sm:$0xff]  }
  0x5b   :  { %792 = vmatprep.subr.bf16.mxu0 %v2133_v55  ;;  %v2174_v55 = vld [vmem:[#allocation5 + $0x164] ss:$8 sps:$4 sm:$0xff]  }
  0x5c   :  { %1546 = vmatpush1.bf16.msra.mxu1 %v2258_v0  ;;  %v2210_v0 = vld [vmem:[#allocation5 + $0x224] ss:$8 sps:$4 sm:$0xff]  }
  0x5d   :  { %1547 = vmatprep.subr.bf16.mxu1 %v2259_v47  ;;  %v2216_v47 = vld [vmem:[#allocation5 + $0x244] ss:$8 sps:$4 sm:$0xff]  }
  0x5e   :  { %793 = vmatpush1.bf16.msra.mxu0 %v2135_v61  ;;  %v2177_v61 = vld [vmem:[#allocation5 + $0x174] ss:$8 sps:$4 sm:$0xff]  }
  0x5f   :  { %794 = vmatprep.subr.bf16.mxu0 %v2136_v62  ;;  %v2267_v62 = vld [vmem:[#allocation7 + $0x50] ss:$8 sps:$4 sm:$0xff]  }
  0x60   :  { %1548 = vmatpush1.bf16.msra.mxu1 %v2261_v52  ;;  %v2226_v52 = vld [vmem:[#allocation5 + $0x280] ss:$8 sps:$4 sm:$0xff]  }
  0x61   :  { %1549 = vmatprep.subr.bf16.mxu1 %v2262_v53  ;;  %v2231_v53 = vld [vmem:[#allocation5 + $0x294] ss:$8 sps:$4 sm:$0xff]  }
  0x62   :  { %795 = vmatpush1.bf16.msra.mxu0 %v2138_v63  ;;  %v2268_v63 = vld [vmem:[#allocation7 + $0x64] ss:$8 sps:$4 sm:$0xff]  }
  0x63   :  { %796 = vmatprep.subr.bf16.mxu0 %v2139_v1  ;;  %v2175_v1 = vld [vmem:[#allocation5 + $0x170] ss:$8 sps:$4 sm:$0xff]  }
  0x64   :  { %1550 = vmatpush1.bf16.msra.mxu1 %v2264_v57  ;;  %v2232_v57 = vld [vmem:[#allocation5 + $0x2a0] ss:$8 sps:$4 sm:$0xff]  }
  0x65   :  { %1551 = vmatprep.subr.bf16.mxu1 %v2265_v60  ;;  %v2235_v60 = vld [vmem:[#allocation5 + $0x2b0] ss:$8 sps:$4 sm:$0xff]  }
  0x66   :  { %797 = vmatpush1.bf16.msra.mxu0 %v2141_v2  ;;  %v2180_v2 = vld [vmem:[#allocation5 + $0x184] ss:$8 sps:$4 sm:$0xff]  }
  0x67   :  { %798 = vmatprep.subr.bf16.mxu0 %v2142_v3  ;;  %v2270_v3 = vld [vmem:[#allocation7 + $0x60] ss:$8 sps:$4 sm:$0xff]  }
  0x68   :  { %1552 = vmatpush1.bf16.msra.mxu1 %v2267_v62  ;;  %v2238_v62 = vld [vmem:[#allocation5 + $0x2c0] ss:$8 sps:$4 sm:$0xff]  }
  0x69   :  { %1553 = vmatprep.subr.bf16.mxu1 %v2268_v63  ;;  %v2243_v63 = vld [vmem:[#allocation5 + $0x2d4] ss:$8 sps:$4 sm:$0xff]  }
  0x6a   :  { %799 = vmatpush1.bf16.msra.mxu0 %v2144_v4  ;;  %v2271_v4 = vld [vmem:[#allocation7 + $0x74] ss:$8 sps:$4 sm:$0xff]  }
  0x6b   :  { %800 = vmatprep.subr.bf16.mxu0 %v2145_v5  ;;  %v2178_v5 = vld [vmem:[#allocation5 + $0x180] ss:$8 sps:$4 sm:$0xff]  }
  0x6c   :  { %1554 = vmatpush1.bf16.msra.mxu1 %v2270_v3  ;;  %v2244_v3 = vld [vmem:[#allocation5 + $0x2e0] ss:$8 sps:$4 sm:$0xff]  }
  0x6d   :  { %1555 = vmatprep.subr.bf16.mxu1 %v2271_v4  ;;  %v2249_v4 = vld [vmem:[#allocation5 + $0x2f4] ss:$8 sps:$4 sm:$0xff]  }
  0x6e   :  { %801 = vmatpush1.bf16.msra.mxu0 %v2147_v6  ;;  %v2183_v6 = vld [vmem:[#allocation5 + $0x194] ss:$8 sps:$4 sm:$0xff]  }
  0x6f   :  { %802 = vmatprep.subr.bf16.mxu0 %v2148_v7  ;;  %v2273_v7 = vld [vmem:[#allocation7 + $0x70] ss:$8 sps:$4 sm:$0xff]  }
  0x70   :  { %1556 = vmatpush1.bf16.msra.mxu1 %v2273_v7  ;;  %v2289_v7 = vld [vmem:[#allocation7 + $0xd4] ss:$8 sps:$4 sm:$0xff]  }
  0x72   :  { %803 = vmatpush1.bf16.msra.mxu0 %v2150_v8  ;;  %v2274_v8 = vld [vmem:[#allocation7 + $0x84] ss:$8 sps:$4 sm:$0xff]  }
  0x73   :  { %804 = vmatprep.subr.bf16.mxu0 %v2151_v13  ;;  %v2276_v13 = vld [vmem:[#allocation7 + $0x80] ss:$8 sps:$4 sm:$0xff]   ;;  %1557 = vmatprep.subr.bf16.mxu1 %v2274_v8  ;;  %v2291_v8 = vld [vmem:[#allocation7 + $0xd0] ss:$8 sps:$4 sm:$0xff]  }
  0x74   :  { %1558 = vmatpush1.bf16.msra.mxu1 %v2276_v13  ;;  %v2295_v13 = vld [vmem:[#allocation7 + $0xf4] ss:$8 sps:$4 sm:$0xff]  }
  0x76   :  { %805 = vmatpush1.bf16.msra.mxu0 %v2153_v15  ;;  %v2277_v15 = vld [vmem:[#allocation7 + $0x94] ss:$8 sps:$4 sm:$0xff]  }
  0x77   :  { %817 = vmatprep.subr.bf16.mxu0 %v2156_v21  ;;  %v2279_v21 = vld [vmem:[#allocation7 + $0x90] ss:$8 sps:$4 sm:$0xff]   ;;  %1559 = vmatprep.subr.bf16.mxu1 %v2277_v15 }
  0x78   :  { %1560 = vmatpush1.bf16.msra.mxu1 %v2279_v21  ;;  %v2297_v15 = vld [vmem:[#allocation7 + $0xf0] ss:$8 sps:$4 sm:$0xff]   ;;  %v924_v21 = vrot.slane %v919_v34, %v2628_v18 }
  0x79   :  { %1968 = vmatmul.mubr.msk.bf16.vlgmr.msra.gmra.mrb[0].mxu0 %vm2680_vm5, %v159_v24  ;;  %v2192_v24 = vld [vmem:[#allocation5 + $0x1c4] ss:$8 sps:$4 sm:$0xff]   ;;  %1561 = vmatprep.subr.bf16.mxu1 %v2280_v22 }
  0x7a   :  { %818 = vmatpush1.bf16.msra.mxu0 %v2154_v26  ;;  %849 = vmatprep.mubr.bf16.mxu0 %v174_v27  ;;  %v2283_v26 = vld [vmem:[#allocation7 + $0xb4] ss:$8 sps:$4 sm:$0xff]   ;;  %v2190_v27 = vld [vmem:[#allocation5 + $0x1c0] ss:$8 sps:$4 sm:$0xff]  }
  0x7b   :  { %819 = vmatprep.subr.bf16.mxu0 %v2159_v31  ;;  %v2285_v31 = vld [vmem:[#allocation7 + $0xb0] ss:$8 sps:$4 sm:$0xff]  }
  0x7c   :  { %1562 = vmatpush1.bf16.msra.mxu1 %v2282_v25 }
  0x7d   :  { %1563 = vmatprep.subr.bf16.mxu1 %v2283_v26 }
  0x7e   :  { %820 = vmatpush1.bf16.msra.mxu0 %v2157_v36  ;;  %v2286_v36 = vld [vmem:[#allocation7 + $0xc4] ss:$8 sps:$4 sm:$0xff]  }
  0x7f   :  { %821 = vmatprep.subr.bf16.mxu0 %v2162_v14  ;;  %v2193_v14 = vld [vmem:[#allocation5 + $0x1d0] ss:$8 sps:$4 sm:$0xff]  }
  0x80   :  { %1564 = vmatpush1.bf16.msra.mxu1 %v2285_v31 }
  0x81   :  { %1565 = vmatprep.subr.bf16.mxu1 %v2286_v36 }
  0x82   :  { %822 = vmatpush1.bf16.msra.mxu0 %v2160_v39  ;;  %v2201_v39 = vld [vmem:[#allocation5 + $0x1f4] ss:$8 sps:$4 sm:$0xff]  }
  0x83   :  { %823 = vmatprep.subr.bf16.mxu0 %v2165_v42  ;;  %v2204_v42 = vld [vmem:[#allocation5 + $0x204] ss:$8 sps:$4 sm:$0xff]  }
  0x86   :  { %824 = vmatpush1.bf16.msra.mxu0 %v2163_v45 }
  0x87   :  { %825 = vmatprep.subr.bf16.mxu0 %v2168_v46  ;;  %v2205_v46 = vld [vmem:[#allocation5 + $0x210] ss:$8 sps:$4 sm:$0xff]  }
  0x8a   :  { %826 = vmatpush1.bf16.msra.mxu0 %v2166_v48  ;;  %v2223_v48 = vld [vmem:[#allocation5 + $0x270] ss:$8 sps:$4 sm:$0xff]  }
  0x8b   :  { %827 = vmatprep.subr.bf16.mxu0 %v2171_v49  ;;  %v2228_v49 = vld [vmem:[#allocation5 + $0x284] ss:$8 sps:$4 sm:$0xff]  }
  0x8e   :  { %828 = vmatpush1.bf16.msra.mxu0 %v2169_v54  ;;  %v2229_v54 = vld [vmem:[#allocation5 + $0x290] ss:$8 sps:$4 sm:$0xff]  }
  0x8f   :  { %829 = vmatprep.subr.bf16.mxu0 %v2174_v55  ;;  %v2234_v55 = vld [vmem:[#allocation5 + $0x2a4] ss:$8 sps:$4 sm:$0xff]  }
  0x92   :  { %830 = vmatpush1.bf16.msra.mxu0 %v2172_v58  ;;  %v2237_v58 = vld [vmem:[#allocation5 + $0x2b4] ss:$8 sps:$4 sm:$0xff]  }
  0x93   :  { %831 = vmatprep.subr.bf16.mxu0 %v2177_v61  ;;  %v2240_v61 = vld [vmem:[#allocation5 + $0x2c4] ss:$8 sps:$4 sm:$0xff]  }
  0x96   :  { %832 = vmatpush1.bf16.msra.mxu0 %v2175_v1  ;;  %v2241_v1 = vld [vmem:[#allocation5 + $0x2d0] ss:$8 sps:$4 sm:$0xff]  }
  0x97   :  { %833 = vmatprep.subr.bf16.mxu0 %v2180_v2  ;;  %v2246_v2 = vld [vmem:[#allocation5 + $0x2e4] ss:$8 sps:$4 sm:$0xff]  }
  0x9a   :  { %834 = vmatpush1.bf16.msra.mxu0 %v2178_v5  ;;  %v2247_v5 = vld [vmem:[#allocation5 + $0x2f0] ss:$8 sps:$4 sm:$0xff]  }
  0x9b   :  { %835 = vmatprep.subr.bf16.mxu0 %v2183_v6  ;;  %v2288_v6 = vld [vmem:[#allocation7 + $0xc0] ss:$8 sps:$4 sm:$0xff]  }
  0x9c   :  { %1566 = vmatpush1.bf16.msra.mxu1 %v2288_v6  ;;  %v2312_v6 = vld [vmem:[#allocation7 + $0x144] ss:$8 sps:$4 sm:$0xff]  }
  0x9d   :  { %1567 = vmatprep.subr.bf16.mxu1 %v2289_v7  ;;  %v2310_v7 = vld [vmem:[#allocation7 + $0x140] ss:$8 sps:$4 sm:$0xff]  }
  0x9e   :  { %836 = vmatpush1.bf16.msra.mxu0 %v2181_v10  ;;  %v2292_v10 = vld [vmem:[#allocation7 + $0xe4] ss:$8 sps:$4 sm:$0xff]  }
  0x9f   :  { %837 = vmatprep.subr.bf16.mxu0 %v2186_v11  ;;  %v2294_v11 = vld [vmem:[#allocation7 + $0xe0] ss:$8 sps:$4 sm:$0xff]  }
  0xa0   :  { %1568 = vmatpush1.bf16.msra.mxu1 %v2291_v8  ;;  %v2315_v8 = vld [vmem:[#allocation7 + $0x154] ss:$8 sps:$4 sm:$0xff]  }
  0xa1   :  { %1569 = vmatprep.subr.bf16.mxu1 %v2292_v10  ;;  %v2318_v10 = vld [vmem:[#allocation7 + $0x164] ss:$8 sps:$4 sm:$0xff]  }
  0xa2   :  { %838 = vmatpush1.bf16.msra.mxu0 %v2184_v17  ;;  %v2300_v17 = vld [vmem:[#allocation7 + $0x104] ss:$8 sps:$4 sm:$0xff]  }
  0xa3   :  { %839 = vmatprep.subr.bf16.mxu0 %v2189_v20  ;;  %v912_v20 = vrot.slane %v903_v33, %v2631_v19 }
  0xa4   :  { %1570 = vmatpush1.bf16.msra.mxu1 %v2294_v11  ;;  %v2316_v11 = vld [vmem:[#allocation7 + $0x160] ss:$8 sps:$4 sm:$0xff]  }
  0xa5   :  { %1571 = vmatprep.subr.bf16.mxu1 %v2295_v13  ;;  %v2321_v13 = vld [vmem:[#allocation7 + $0x174] ss:$8 sps:$4 sm:$0xff]  }
  0xa6   :  { %840 = vmatpush1.bf16.msra.mxu0 %v2187_v23  ;;  %v928_v23 = vrot.slane %v919_v34, %v2631_v19  ;;  %v2327_v34 = vld [vmem:[#allocation7 + $0x194] ss:$8 sps:$4 sm:$0xff]  }
  0xa7   :  { %841 = vmatprep.subr.bf16.mxu0 %v2192_v24 }
  0xa8   :  { %1572 = vmatpush1.bf16.msra.mxu1 %v2297_v15  ;;  %v2319_v15 = vld [vmem:[#allocation7 + $0x170] ss:$8 sps:$4 sm:$0xff]  }
  0xa9   :  { %1584 = vmatprep.subr.bf16.mxu1 %v2300_v17  ;;  %v2324_v17 = vld [vmem:[#allocation7 + $0x184] ss:$8 sps:$4 sm:$0xff]  }
  0xaa   :  { %842 = vmatpush1.bf16.msra.mxu0 %v2190_v27 }
  0xab   :  { %843 = vmatprep.subr.bf16.mxu0 %v2195_v30 }
  0xae   :  { %844 = vmatpush1.bf16.msra.mxu0 %v2193_v14 }
  0xaf   :  { %845 = vmatprep.subr.bf16.mxu0 %v2198_v37 }
  0xb2   :  { %846 = vmatpush1.bf16.msra.mxu0 %v2196_v38 }
  0xb3   :  { %847 = vmatprep.subr.bf16.mxu0 %v2201_v39 }
  0xb6   :  { %848 = vmatpush1.bf16.msra.mxu0 %v2199_v41 }
  0xb7   :  { %860 = vmatprep.subr.bf16.mxu0 %v2204_v42 }
  0xb9   :  { %850 = vmatmul.mubr.bf16.vlgmr.msra.gmra.mrb[0].mxu0 %v173_v56  ;;  %v2217_v56 = vld [vmem:[#allocation5 + $0x250] ss:$8 sps:$4 sm:$0xff]  }
  0xba   :  { %861 = vmatpush1.bf16.msra.mxu0 %v2202_v43  ;;  %1969 = vmatprep.mubr.msk.bf16.mxu0 %vm2736_vm11, %v185_v32  ;;  %v2225_v32 = vld [vmem:[#allocation5 + $0x274] ss:$8 sps:$4 sm:$0xff]  }
  0xbb   :  { %862 = vmatprep.subr.bf16.mxu0 %v2207_v44 }
  0xbe   :  { %863 = vmatpush1.bf16.msra.mxu0 %v2205_v46 }
  0xbf   :  { %864 = vmatprep.subr.bf16.mxu0 %v2210_v0 }
  0xc2   :  { %865 = vmatpush1.bf16.msra.mxu0 %v2208_v12 }
  0xc3   :  { %866 = vmatprep.subr.bf16.mxu0 %v2213_v16 }
  0xc6   :  { %867 = vmatpush1.bf16.msra.mxu0 %v2211_v40 }
  0xc7   :  { %868 = vmatprep.subr.bf16.mxu0 %v2216_v47 }
  0xca   :  { %869 = vmatpush1.bf16.msra.mxu0 %v2214_v50 }
  0xcb   :  { %870 = vmatprep.subr.bf16.mxu0 %v2219_v51 }
  0xce   :  { %871 = vmatpush1.bf16.msra.mxu0 %v2217_v56 }
  0xcf   :  { %872 = vmatprep.subr.bf16.mxu0 %v2222_v28 }
  0xd2   :  { %873 = vmatpush1.bf16.msra.mxu0 %v2220_v29 }
  0xd3   :  { %874 = vmatprep.subr.bf16.mxu0 %v2225_v32 }
  0xd6   :  { %875 = vmatpush1.bf16.msra.mxu0 %v2223_v48 }
  0xd7   :  { %876 = vmatprep.subr.bf16.mxu0 %v2228_v49 }
  0xda   :  { %877 = vmatpush1.bf16.msra.mxu0 %v2226_v52 }
  0xdb   :  { %878 = vmatprep.subr.bf16.mxu0 %v2231_v53 }
  0xde   :  { %879 = vmatpush1.bf16.msra.mxu0 %v2229_v54 }
  0xdf   :  { %880 = vmatprep.subr.bf16.mxu0 %v2234_v55 }
  0xe2   :  { %881 = vmatpush1.bf16.msra.mxu0 %v2232_v57 }
  0xe3   :  { %882 = vmatprep.subr.bf16.mxu0 %v2237_v58  ;;  %v2298_v58 = vld [vmem:[#allocation7 + $0x100] ss:$8 sps:$4 sm:$0xff]  }
  0xe6   :  { %883 = vmatpush1.bf16.msra.mxu0 %v2235_v60 }
  0xe7   :  { %884 = vmatprep.subr.bf16.mxu0 %v2240_v61 }
  0xea   :  { %885 = vmatpush1.bf16.msra.mxu0 %v2238_v62  ;;  %v2303_v62 = vld [vmem:[#allocation7 + $0x114] ss:$8 sps:$4 sm:$0xff]  }
  0xeb   :  { %886 = vmatprep.subr.bf16.mxu0 %v2243_v63 }
  0xee   :  { %887 = vmatpush1.bf16.msra.mxu0 %v2241_v1  ;;  %v2301_v1 = vld [vmem:[#allocation7 + $0x110] ss:$8 sps:$4 sm:$0xff]  }
  0xef   :  { %888 = vmatprep.subr.bf16.mxu0 %v2246_v2  ;;  %v2306_v2 = vld [vmem:[#allocation7 + $0x124] ss:$8 sps:$4 sm:$0xff]  }
  0xf2   :  { %889 = vmatpush1.bf16.msra.mxu0 %v2244_v3  ;;  %v2304_v3 = vld [vmem:[#allocation7 + $0x120] ss:$8 sps:$4 sm:$0xff]  }
  0xf3   :  { %890 = vmatprep.subr.bf16.mxu0 %v2249_v4  ;;  %v2309_v4 = vld [vmem:[#allocation7 + $0x134] ss:$8 sps:$4 sm:$0xff]  }
  0xf6   :  { %891 = vmatpush1.bf16.msra.mxu0 %v2247_v5  ;;  %v2307_v5 = vld [vmem:[#allocation7 + $0x130] ss:$8 sps:$4 sm:$0xff]  }
  0xf9   :  { %1970 = vmatmul.mubr.msk.bf16.vlgmr.msra.gmra.mrb[0].mxu0 %vm2736_vm11, %v184_v35  ;;  %v908_v35 = vrot.slane %v903_v33, %v2628_v18  ;;  %v2322_v33 = vld [vmem:[#allocation7 + $0x180] ss:$8 sps:$4 sm:$0xff]  }
 0x1cc   :  { %v894_v22 = vpop.f32.mrb[0].mxu0 }
 0x1cd   :  { %v915_v24 = vmul.f32 %v908_v35, %v894_v22  ;;  %v896_v25 = vpop.f32.mrb[1].mxu0  ;;  %v2333_v22 = vld [vmem:[#allocation7 + $0x1b4] ss:$8 sps:$4 sm:$0xff]  }
 0x1ce   :  { %v916_v26 = vmul.f32 %v912_v20, %v896_v25  ;;  %v898_v27 = vpop.f32.mrb[2].mxu0  ;;  %v2334_v25 = vld [vmem:[#allocation7 + $0x1c0] ss:$8 sps:$4 sm:$0xff]  }
 0x1cf   :  { %v931_v30 = vadd.f32 %v924_v21, %v915_v24  ;;  %v917_v31 = vmul.f32 %v908_v35, %v898_v27  ;;  %v900_v36 = vpop.f32.mrb[3].mxu0  ;;  %v2325_v35 = vld [vmem:[#allocation7 + $0x190] ss:$8 sps:$4 sm:$0xff]   ;;  %v2336_v24 = vld [vmem:[#allocation7 + $0x1c4] ss:$8 sps:$4 sm:$0xff]  }
 0x1d0   :  { %v932_v14 = vadd.f32 %v928_v23, %v916_v26  ;;  %v918_v37 = vmul.f32 %v912_v20, %v900_v36  ;;  %v2330_v20 = vld [vmem:[#allocation7 + $0x1a4] ss:$8 sps:$4 sm:$0xff]   ;;  %v2339_v26 = vld [vmem:[#allocation7 + $0x1d4] ss:$8 sps:$4 sm:$0xff]   ;;  %v2337_v27 = vld [vmem:[#allocation7 + $0x1d0] ss:$8 sps:$4 sm:$0xff]  }
 0x1d1   :  { %v2763_v38 = vmax.f32 %v931_v30, 0.0  ;;  %v933_v39 = vadd.f32 %v924_v21, %v917_v31  ;;  %v2328_v21 = vld [vmem:[#allocation7 + $0x1a0] ss:$8 sps:$4 sm:$0xff]   ;;  %v2342_v30 = vld [vmem:[#allocation7 + $0x1e4] ss:$8 sps:$4 sm:$0xff]  }
 0x1d2   :  { %v936_v41 = vmax.f32 %v932_v14, 0.0  ;;  %v934_v42 = vadd.f32 %v928_v23, %v918_v37  ;;  %v2331_v23 = vld [vmem:[#allocation7 + $0x1b0] ss:$8 sps:$4 sm:$0xff]   ;;  %v2340_v31 = vld [vmem:[#allocation7 + $0x1e0] ss:$8 sps:$4 sm:$0xff]  }
 0x1d3   :  { %v2765_v43 = vmax.f32 %v933_v39, 0.0  ;;  %v939_v44 = vrot.slane %v2763_v38, 7  ;;  %v953_v46 = vrot.slane %v2763_v38, 1  ;;  %v2345_v36 = vld [vmem:[#allocation7 + $0x1f4] ss:$8 sps:$4 sm:$0xff]  }
 0x1d4   :  { %v938_v0 = vmax.f32 %v934_v42, 0.0  ;;  %v954_v12 = vrot.slane %v936_v41, 1  ;;  %v940_v51 = vrot.slane %v936_v41, 7  ;;  %v2343_v14 = vld [vmem:[#allocation7 + $0x1f0] ss:$8 sps:$4 sm:$0xff]  }
 0x1d5   :  { %v941_v16 = vrot.slane %v2765_v43, 7  ;;  %v955_v40 = vrot.slane %v2765_v43, 1  ;;  %v951_v47 = vpack.c.bf16 %v2765_v43, %v2763_v38  ;;  %v2348_v37 = vld [vmem:[#allocation7 + $0x204] ss:$8 sps:$4 sm:$0xff]   ;;  %v2346_v39 = vld [vmem:[#allocation7 + $0x200] ss:$8 sps:$4 sm:$0xff]  }
 0x1d6   :  { %v956_v50 = vrot.slane %v938_v0, 1  ;;  %v942_v56 = vrot.slane %v938_v0, 7  ;;  %v952_v28 = vpack.c.bf16 %v938_v0, %v936_v41  ;;  %v2351_v41 = vld [vmem:[#allocation7 + $0x214] ss:$8 sps:$4 sm:$0xff]   ;;  %v2349_v42 = vld [vmem:[#allocation7 + $0x210] ss:$8 sps:$4 sm:$0xff]  }
 0x1d7   :  { %v2775_v29 = vsel %vm179_vm6, %v953_v46, %v955_v40  ;;  %v2779_v32 = vsel %vm179_vm6, %v955_v40, %v953_v46  ;;  %v943_v48 = vsel %vm154_vm4, %v939_v44, %v941_v16  ;;  %v945_v49 = vsel %vm154_vm4, %v941_v16, %v939_v44  ;;  %v2354_v44 = vld [vmem:[#allocation7 + $0x224] ss:$8 sps:$4 sm:$0xff]   ;;  %v2352_v46 = vld [vmem:[#allocation7 + $0x220] ss:$8 sps:$4 sm:$0xff]   ;;  %v2357_v0 = vld [vmem:[#allocation7 + $0x234] ss:$8 sps:$4 sm:$0xff]  }
 0x1d8   :  { %v944_v52 = vsel %vm154_vm4, %v940_v51, %v942_v56  ;;  %v946_v53 = vsel %vm154_vm4, %v942_v56, %v940_v51  ;;  %v947_v54 = vpack.c.bf16 %v943_v48, %v945_v49  ;;  %v2791_v55 = vsel %vm179_vm6, %v954_v12, %v956_v50  ;;  %v2360_v16 = vld [vmem:[#allocation7 + $0x244] ss:$8 sps:$4 sm:$0xff]   ;;  %v2358_v38 = vld [vmem:[#allocation7 + $0x240] ss:$8 sps:$4 sm:$0xff]   ;;  %v2363_v43 = vld [vmem:[#allocation7 + $0x254] ss:$8 sps:$4 sm:$0xff]  }
 0x1d9   :  { %v948_v57 = vpack.c.bf16 %v944_v52, %v946_v53  ;;  %v2795_v60 = vsel %vm179_vm6, %v956_v50, %v954_v12  ;;  %v961_v61 = vpack.c.bf16 %v2779_v32, %v2775_v29  ;;  %v2355_v12 = vld [vmem:[#allocation7 + $0x230] ss:$8 sps:$4 sm:$0xff]   ;;  %v2364_v50 = vld [vmem:[#allocation7 + $0x260] ss:$8 sps:$4 sm:$0xff]   ;;  %v2369_v51 = vld [vmem:[#allocation7 + $0x274] ss:$8 sps:$4 sm:$0xff]  }
 0x1da   :  { %v962_v63 = vpack.c.bf16 %v2795_v60, %v2791_v55  ;;  %v2361_v40 = vld [vmem:[#allocation7 + $0x250] ss:$8 sps:$4 sm:$0xff]   ;;  %v2370_v48 = vld [vmem:[#allocation7 + $0x280] ss:$8 sps:$4 sm:$0xff]   ;;  %v2375_v49 = vld [vmem:[#allocation7 + $0x294] ss:$8 sps:$4 sm:$0xff]  }
 0x1db   :  { %2067 = vmatprep.mubr.msk.bf16.mxu1 %vm2680_vm5, %v948_v57  ;;  %v2367_v56 = vld [vmem:[#allocation7 + $0x270] ss:$8 sps:$4 sm:$0xff]   ;;  %v2378_v53 = vld [vmem:[#allocation7 + $0x2a4] ss:$8 sps:$4 sm:$0xff]   ;;  %v2381_v55 = vld [vmem:[#allocation7 + $0x2b4] ss:$8 sps:$4 sm:$0xff]  }
 0x1dc   :  { %2068 = vmatmul.mubr.msk.bf16.vlgmr.msra.gmra.mrb[0].mxu1 %vm2680_vm5, %v947_v54  ;;  %v2373_v52 = vld [vmem:[#allocation7 + $0x290] ss:$8 sps:$4 sm:$0xff]   ;;  %v2376_v54 = vld [vmem:[#allocation7 + $0x2a0] ss:$8 sps:$4 sm:$0xff]  }
 0x1dd   :  { %1585 = vmatpush1.bf16.msra.mxu1 %v2298_v58  ;;  %1616 = vmatprep.mubr.bf16.mxu1 %v952_v28  ;;  %v2372_v28 = vld [vmem:[#allocation7 + $0x284] ss:$8 sps:$4 sm:$0xff]   ;;  %v2379_v57 = vld [vmem:[#allocation7 + $0x2b0] ss:$8 sps:$4 sm:$0xff]   ;;  %v2382_v60 = vld [vmem:[#allocation7 + $0x2c0] ss:$8 sps:$4 sm:$0xff]  }
 0x1de   :  { %1586 = vmatprep.subr.bf16.mxu1 %v2303_v62  ;;  %v2384_v58 = vld [vmem:[#allocation7 + $0x2c4] ss:$8 sps:$4 sm:$0xff]   ;;  %v2387_v62 = vld [vmem:[#allocation7 + $0x2d4] ss:$8 sps:$4 sm:$0xff]  }
 0x1e1   :  { %1587 = vmatpush1.bf16.msra.mxu1 %v2301_v1  ;;  %v2390_v1 = vld [vmem:[#allocation7 + $0x2e4] ss:$8 sps:$4 sm:$0xff]  }
 0x1e2   :  { %1588 = vmatprep.subr.bf16.mxu1 %v2306_v2  ;;  %v2388_v2 = vld [vmem:[#allocation7 + $0x2e0] ss:$8 sps:$4 sm:$0xff]  }
 0x1e5   :  { %1589 = vmatpush1.bf16.msra.mxu1 %v2304_v3  ;;  %v2393_v3 = vld [vmem:[#allocation7 + $0x2f4] ss:$8 sps:$4 sm:$0xff]  }
 0x1e6   :  { %1590 = vmatprep.subr.bf16.mxu1 %v2309_v4  ;;  %v2391_v4 = vld [vmem:[#allocation7 + $0x2f0] ss:$8 sps:$4 sm:$0xff]  }
 0x1e9   :  { %1591 = vmatpush1.bf16.msra.mxu1 %v2307_v5 }
 0x1ea   :  { %1592 = vmatprep.subr.bf16.mxu1 %v2312_v6 }
 0x1ed   :  { %1593 = vmatpush1.bf16.msra.mxu1 %v2310_v7 }
 0x1ee   :  { %1594 = vmatprep.subr.bf16.mxu1 %v2315_v8 }
 0x1f1   :  { %1595 = vmatpush1.bf16.msra.mxu1 %v2313_v59 }
 0x1f2   :  { %1596 = vmatprep.subr.bf16.mxu1 %v2318_v10 }
 0x1f5   :  { %1597 = vmatpush1.bf16.msra.mxu1 %v2316_v11 }
 0x1f6   :  { %1598 = vmatprep.subr.bf16.mxu1 %v2321_v13 }
 0x1f9   :  { %1599 = vmatpush1.bf16.msra.mxu1 %v2319_v15 }
 0x1fa   :  { %1600 = vmatprep.subr.bf16.mxu1 %v2324_v17 }
 0x1fd   :  { %1601 = vmatpush1.bf16.msra.mxu1 %v2322_v33 }
 0x1fe   :  { %1602 = vmatprep.subr.bf16.mxu1 %v2327_v34 }
 0x201   :  { %1603 = vmatpush1.bf16.msra.mxu1 %v2325_v35 }
 0x202   :  { %1604 = vmatprep.subr.bf16.mxu1 %v2330_v20 }
 0x205   :  { %1605 = vmatpush1.bf16.msra.mxu1 %v2328_v21 }
 0x206   :  { %1606 = vmatprep.subr.bf16.mxu1 %v2333_v22 }
 0x209   :  { %1607 = vmatpush1.bf16.msra.mxu1 %v2331_v23 }
 0x20a   :  { %1608 = vmatprep.subr.bf16.mxu1 %v2336_v24 }
 0x20d   :  { %1609 = vmatpush1.bf16.msra.mxu1 %v2334_v25 }
 0x20e   :  { %1610 = vmatprep.subr.bf16.mxu1 %v2339_v26 }
 0x211   :  { %1611 = vmatpush1.bf16.msra.mxu1 %v2337_v27 }
 0x212   :  { %1612 = vmatprep.subr.bf16.mxu1 %v2342_v30 }
 0x215   :  { %1613 = vmatpush1.bf16.msra.mxu1 %v2340_v31  ;;  %v1703_v31 = vld [vmem:[%s2886_s7] sm:$0x3] }
 0x216   :  { %1614 = vmatprep.subr.bf16.mxu1 %v2345_v36 }
 0x219   :  { %1615 = vmatpush1.bf16.msra.mxu1 %v2343_v14 }
 0x21a   :  { %1627 = vmatprep.subr.bf16.mxu1 %v2348_v37 }
 0x21c   :  { %1617 = vmatmul.mubr.bf16.vlgmr.msra.gmra.mrb[0].mxu1 %v951_v47  ;;  %v2366_v47 = vld [vmem:[#allocation7 + $0x264] ss:$8 sps:$4 sm:$0xff]  }
 0x21d   :  { %1628 = vmatpush1.bf16.msra.mxu1 %v2346_v39  ;;  %2069 = vmatprep.mubr.msk.bf16.mxu1 %vm2736_vm11, %v962_v63  ;;  %v2385_v63 = vld [vmem:[#allocation7 + $0x2d0] ss:$8 sps:$4 sm:$0xff]  }
 0x21e   :  { %1629 = vmatprep.subr.bf16.mxu1 %v2351_v41 }
 0x221   :  { %1630 = vmatpush1.bf16.msra.mxu1 %v2349_v42 }
 0x222   :  { %1631 = vmatprep.subr.bf16.mxu1 %v2354_v44 }
 0x225   :  { %1632 = vmatpush1.bf16.msra.mxu1 %v2352_v46 }
 0x226   :  { %1633 = vmatprep.subr.bf16.mxu1 %v2357_v0  ;;  %v2071_v0 = vld [vmem:[%s2887_s8] ss:$0 sm:$0xff] }
 0x229   :  { %1634 = vmatpush1.bf16.msra.mxu1 %v2355_v12 }
 0x22a   :  { %1635 = vmatprep.subr.bf16.mxu1 %v2360_v16 }
 0x22d   :  { %1636 = vmatpush1.bf16.msra.mxu1 %v2358_v38 }
 0x22e   :  { %1637 = vmatprep.subr.bf16.mxu1 %v2363_v43 }
 0x231   :  { %1638 = vmatpush1.bf16.msra.mxu1 %v2361_v40 }
 0x232   :  { %1639 = vmatprep.subr.bf16.mxu1 %v2366_v47 }
 0x235   :  { %1640 = vmatpush1.bf16.msra.mxu1 %v2364_v50 }
 0x236   :  { %1641 = vmatprep.subr.bf16.mxu1 %v2369_v51  ;;  %v1727_v51 = vld [vmem:[%s2888_s9] sm:$0x3] }
 0x239   :  { %1642 = vmatpush1.bf16.msra.mxu1 %v2367_v56 }
 0x23a   :  { %1643 = vmatprep.subr.bf16.mxu1 %v2372_v28 }
 0x23d   :  { %1644 = vmatpush1.bf16.msra.mxu1 %v2370_v48 }
 0x23e   :  { %1645 = vmatprep.subr.bf16.mxu1 %v2375_v49 }
 0x241   :  { %1646 = vmatpush1.bf16.msra.mxu1 %v2373_v52 }
 0x242   :  { %1647 = vmatprep.subr.bf16.mxu1 %v2378_v53 }
 0x245   :  { %1648 = vmatpush1.bf16.msra.mxu1 %v2376_v54 }
 0x246   :  { %1649 = vmatprep.subr.bf16.mxu1 %v2381_v55 }
 0x249   :  { %1650 = vmatpush1.bf16.msra.mxu1 %v2379_v57 }
 0x24a   :  { %1651 = vmatprep.subr.bf16.mxu1 %v2384_v58 }
 0x24d   :  { %1652 = vmatpush1.bf16.msra.mxu1 %v2382_v60 }
 0x24e   :  { %1653 = vmatprep.subr.bf16.mxu1 %v2387_v62 }
 0x251   :  { %1654 = vmatpush1.bf16.msra.mxu1 %v2385_v63 }
 0x252   :  { %1655 = vmatprep.subr.bf16.mxu1 %v2390_v1 }
 0x255   :  { %1656 = vmatpush1.bf16.msra.mxu1 %v2388_v2 }
 0x256   :  { %1657 = vmatprep.subr.bf16.mxu1 %v2393_v3 }
 0x259   :  { %1658 = vmatpush1.bf16.msra.mxu1 %v2391_v4  ;;  %v2072_v4 = vld [vmem:[%s2889_s10] ss:$0 sm:$0xff]  ;;  %s2510_s10 = smov 32  }
 0x25c   :  { %2070 = vmatmul.mubr.msk.bf16.vlgmr.msra.gmra.mrb[0].mxu1 %vm2736_vm11, %v961_v61 }
 0x32f   :  { %v2818_v5 = vpop.f32.mrb[0].mxu1 }
 0x330   :  { %v2820_v6 = vpop.f32.mrb[1].mxu1 }
 0x331   :  { %v1670_v7 = vadd.f32 %v2820_v6, %v2818_v5  ;;  %v2824_v8 = vpop.f32.mrb[2].mxu1 }
 0x332   :  { %v2826_v59 = vpop.f32.mrb[3].mxu1 }
 0x333   :  { %v1671_v10 = vadd.f32 %v2826_v59, %v2824_v8 }
 0x335   :  { %1674 = vrot.lane.b32.xlu0 %v1671_v10, %s2508_s4 }
 0x339   :  { %1672 = vrot.lane.b32.xlu0 %v1670_v7, %s2508_s4 }
 0x3a7   :  { %v1675_v45 = vpop.permute.xlu0 %1674 }
 0x3a8   :  { %v1679_v29 = vadd.f32 %v1675_v45, %v1671_v10 }
 0x3aa   :  { %1682 = vrot.lane.b32.xlu1 %v1679_v29, %s2509_s5 }
 0x3ab   :  { %v1673_v32 = vpop.permute.xlu0 %1672 }
 0x3ac   :  { %v1678_v61 = vadd.f32 %v1673_v32, %v1670_v7 }
 0x3ae   :  { %1680 = vrot.lane.b32.xlu1 %v1678_v61, %s2509_s5 }
 0x41c   :  { %v1683_v11 = vpop.permute.xlu1 %1682 }
 0x41d   :  { %v1685_v13 = vadd.f32 %v1683_v11, %v1679_v29 }
 0x41f   :  { %v1694_v15 = vsel %vm1686_vm12, %v1685_v13, 0.0 }
 0x420   :  { %v1695_v17 = vrot.slane %v1694_v15, 4  ;;  %v1681_v33 = vpop.permute.xlu1 %1680 }
 0x421   :  { %v1684_v34 = vadd.f32 %v1681_v33, %v1678_v61 }
 0x422   :  { %v1696_v35 = vadd.f32 %v1695_v17, %v1694_v15 }
 0x423   :  { %v1687_v20 = vsel %vm1686_vm12, %v1684_v34, 0.0 }
 0x424   :  { %v1697_v21 = vrot.slane %v1696_v35, 2  ;;  %v1688_v22 = vrot.slane %v1687_v20, 4 }
 0x426   :  { %v1698_v23 = vadd.f32 %v1697_v21, %v1696_v35  ;;  %v1689_v24 = vadd.f32 %v1688_v22, %v1687_v20  ;;  %v2511_v21 = vmov 1966171168  }
 0x427   :  { %v1798_v22 = vunpack.c.l.s4 %v2511_v21 }
 0x428   :  { %v1690_v25 = vrot.slane %v1689_v24, 2  ;;  %v1699_v26 = vrot.slane %v1698_v23, 1 }
 0x42a   :  { %v1691_v27 = vadd.f32 %v1690_v25, %v1689_v24  ;;  %v1700_v30 = vadd.f32 %v1699_v26, %v1698_v23  ;;  %v1799_v24 = vunpack.c.0.s8 %v1798_v22 }
 0x42c   :  { %v1702_v36 = vmul.f32 0.015625, %v1700_v30  ;;  %v1692_v14 = vrot.slane %v1691_v27, 1  ;;  %v1802_v30 = vsub.s32 %v1799_v24, %v2620_v9 }
 0x42e   :  { %v1705_v37 = vmul.f32 %v1703_v31, %v1702_v36  ;;  %v1693_v39 = vadd.f32 %v1692_v14, %v1691_v27 }
 0x430   :  { %v1710_v41 = vsel %vm1706_vm13, %v1705_v37, 0.0  ;;  %v1701_v42 = vmul.f32 0.015625, %v1693_v39 }
 0x431   :  { %1711 = vadd.xlane.f32.xlu0 %v1710_v41 }
 0x432   :  { %v1704_v44 = vmul.f32 %v1703_v31, %v1701_v42 }
 0x434   :  { %v1707_v46 = vsel %vm1706_vm13, %v1704_v44, 0.0 }
 0x435   :  { %1708 = vadd.xlane.f32.xlu1 %v1707_v46 }
 0x447   :  { %1720 = vbcast.lane.b32.xlu0 %v2071_v0, 256 }
 0x4be   :  { %v1712_v12 = vpop.xlane.xlu0 %1711 }
 0x4c2   :  { %v1709_v16 = vpop.xlane.xlu1 %1708  ;;  %v1721_v38 = vpop.permute.xlu0 %1720 }
 0x4c3   :  { %v1723_v43 = vadd.f32 %v1721_v38, %v1709_v16  ;;  %v1724_v40 = vadd.f32 %v1721_v38, %v1712_v12 }
 0x4c5   :  { %v1725_v47 = vmax.f32 %v1723_v43, 0.0  ;;  %v1726_v50 = vmax.f32 %v1724_v40, 0.0  ;;  %v2402_v40 = vld [vmem:[#allocation2] sm:$0xff] }
 0x4c7   :  { %1735 = vperm.xlu1 %2104, %v1726_v50   ;;  %1730 = vperm.xlu0 %2105, %v1725_v47   ;;  %v2403_v50 = vld [vmem:[#allocation2 + $0x8] sm:$0xff] }
 0x546   :  { %v1736_v56 = vpop.permute.xlu1 %1735  ;;  %v1731_v28 = vpop.permute.xlu0 %1730 }
 0x547   :  { %v1739_v48 = vmul.f32 %v1736_v56, %v1727_v51  ;;  %v1738_v49 = vmul.f32 %v1731_v28, %v1727_v51  ;;  %v2404_v56 = vld [vmem:[#allocation2 + $0x10] sm:$0xff] }
 0x549   :  { %v1747_v52 = vsel %vm1706_vm13, %v1739_v48, 0.0  ;;  %v1740_v53 = vsel %vm1706_vm13, %v1738_v49, 0.0  ;;  %v2405_v48 = vld [vmem:[#allocation2 + $0x18] sm:$0xff] }
 0x54a   :  { %v1748_v54 = vrot.slane %v1747_v52, 4  ;;  %v1741_v55 = vrot.slane %v1740_v53, 4 }
 0x54c   :  { %v1749_v57 = vadd.f32 %v1748_v54, %v1747_v52  ;;  %v1742_v58 = vadd.f32 %v1741_v55, %v1740_v53 }
 0x54e   :  { %v1750_v60 = vrot.slane %v1749_v57, 2  ;;  %v1743_v62 = vrot.slane %v1742_v58, 2 }
 0x550   :  { %v1751_v63 = vadd.f32 %v1750_v60, %v1749_v57  ;;  %v1744_v1 = vadd.f32 %v1743_v62, %v1742_v58 }
 0x552   :  { %v1752_v2 = vrot.slane %v1751_v63, 1  ;;  %v1745_v3 = vrot.slane %v1744_v1, 1 }
 0x554   :  { %v1753_v7 = vadd.f32 %v1752_v2, %v1751_v63  ;;  %v1746_v10 = vadd.f32 %v1745_v3, %v1744_v1 }
 0x556   :  { %v1762_v45 = vadd.f32 %v2072_v4, %v1753_v7  ;;  %v1761_v29 = vadd.f32 %v2072_v4, %v1746_v10 }
 0x558   :  { %v2074_v32 = vmul.f32 -1.442695, %v1762_v45  ;;  %v2073_v61 = vmul.f32 -1.442695, %v1761_v29 }
 0x55a   :  { %2394 = vpow2.f32 %v2074_v32 }
 0x55b   :  { %2396 = vpow2.f32 %v2073_v61 }
 0x564   :  { %v2395_v11 = vpop.eup %2394 }
 0x565   :  { %v2397_v13 = vpop.eup %2396  ;;  %v1770_v15 = vadd.f32 1.0, %v2395_v11 }
 0x566   :  { %v1769_v17 = vadd.f32 1.0, %v2397_v13 }
 0x567   :  { %2398 = vrcp.f32 %v1770_v15 }
 0x568   :  { %2400 = vrcp.f32 %v1769_v17 }
 0x571   :  { %v2399_v33 = vpop.eup %2398 }
 0x572   :  { %v1777_v34 = vrot.slane %v2399_v33, 7  ;;  %v2401_v35 = vpop.eup %2400 }
 0x574   :  { %v1779_v20 = vsel %vm1778_vm14, %v1777_v34, %v2401_v35 }
 0x575   :  { %1787 = vrot.lane.b32.xlu0 %v1779_v20, %s2509_s5  ;;  %1781 = vrot.lane.b32.xlu1 %v1779_v20, %s2510_s10 }
 0x579   :  { %1784 = vrot.lane.b32.xlu1 %v1779_v20, %s2508_s4 }
 0x5e7   :  { %v1782_v23 = vpop.permute.xlu1 %1781  ;;  %v1788_v27 = vpop.permute.xlu0 %1787 }
 0x5e8   :  { %v1790_v25 = vsel %vm1686_vm12, %v1779_v20, %v1782_v23 }
 0x5eb   :  { %v1785_v26 = vpop.permute.xlu1 %1784 }
 0x5ec   :  { %v1792_v31 = vsel %vm1791_vm15, %v1790_v25, %v1785_v26 }
 0x5ed   :  { %v1794_v36 = vsel %vm1793_vm0, %v1792_v31, %v1788_v27 }
 0x5ee   :  { %v1796_v14 = vcombine.low %v1794_v36, %v1794_v36 }
 0x5f0   :  { %v1803_v37 = vrot.slane %v1796_v14, %v1802_v30 }
 0x5f2   :  { %v1804_v39 = vcombine.high %v1803_v37, %v1803_v37  ;;  %v1811_v41 = vrot.slane %v1803_v37, %v1802_v30 }
 0x5f4   :  { %v1818_v42 = vrot.slane %v1804_v39, %v1802_v30  ;;  %v1822_v44 = vrot.slane %v1811_v41, %v2628_v18  ;;  %v1826_v46 = vrot.slane %v1811_v41, %v2631_v19 }
 0x5f6   :  { %v1830_v0 = vrot.slane %v1818_v42, %v2628_v18  ;;  %v1834_v12 = vrot.slane %v1818_v42, %v2631_v19  ;;  %v1839_v16 = vmul.f32 %v1822_v44, %v2818_v5  ;;  %v1840_v38 = vmul.f32 %v1826_v46, %v2820_v6 }
 0x5f8   :  { %v1841_v9 = vmul.f32 %v1830_v0, %v2824_v8  ;;  %v1842_v43 = vmul.f32 %v1834_v12, %v2826_v59  ;;  %v1843_v47 = vadd.f32 %v2402_v40, %v1839_v16  ;;  %v1844_v51 = vadd.f32 %v2403_v50, %v1840_v38 }
 0x5fa   :  { %v1845_v28 = vadd.f32 %v2404_v56, %v1841_v9  ;;  %v1846_v18 = vadd.f32 %v2405_v48, %v1842_v43  ;;  %1847 = vst [vmem:[#allocation8] sm:$0xff] %v1843_v47  ;;  %1848 = vst [vmem:[#allocation8 + $0x8] sm:$0xff] %v1844_v51 }
 0x5fc   :  { %1849 = vst [vmem:[#allocation8 + $0x10] sm:$0xff] %v1845_v28  ;;  %1850 = vst [vmem:[#allocation8 + $0x18] sm:$0xff] %v1846_v18 }
 0x5fd   :  { %2483 = shalt.err (!%p2480_p0)
}
 0x5fe   :  { %s2484_s17 = scalar_lea.hbm %s2890_s11, 512 }
 0x5ff   :  { %p2485_p1 = scmp.ne.s32.totalorder %s2890_s11, %s2484_s17  ;;  %p2488_p2 = scmp.lt.u32.totalorder %s2484_s17, %s2890_s11 }
 0x601   :  { %p2490_p3 = pnand %p2488_p2, %p2485_p1 }
 0x603   :  { %2493 = shalt.err (!%p2490_p3)
}
 0x604   :  { %1862 = dma.vmem_to_hbm [thread:$0]  %s1857_s12, 512, %s2890_s11, [#allocation4], %s2504_s3, %s2504_s3, %s2505_s18  }
 0x605   :  { %2498 = dma.done.wait [#allocation4], 512  }
 0x606   :  { %2499 = vsyncadd [#allocation4], 4294966784 }
 0x607   :  { %1866 = vsyncpa [#allocation3], 1 }
 0x608   :  { %1867 = vsyncpa [#allocation6], 1 }
 0x609   :  { %1868 = vsyncpa [#allocation4], 1 }

</bundles_post_ra>
